<compile_context>
chip_gen: v5e
topology: v5e:2x2
jax: 0.10.0
libtpu: 0.0.40
codegen_flags: <defaults>
</compile_context>

<pallas_src>
import jax
import jax.numpy as jnp
from jax import lax
from jax.experimental import pallas as pl
from jax.experimental.pallas import tpu as pltpu

# ---------------- static configuration (all Python ints) --------------------
N, H, W = 2, 16, 16          # batch, spatial
C_IN, C_OUT = 4, 8
K1, K2 = 3, 3
STRIDE = 1
P1 = (K1 - 1) // 2
P2 = (K2 - 1) // 2
EPS = 1e-5

R2 = N * H                   # slab rows (32)
WIN = W * C_IN               # slab lanes for C_IN activations  (64)
WOUT = W * C_OUT             # slab lanes for C_OUT activations (128)
B0 = 8                       # sublane-aligned interior start in the row-pad scratch
PAD_ROWS = B0 + R2 + B0      # 48
INV_COUNT = 1.0 / (N * H * W)

assert STRIDE == 1
assert K1 == 3 and K2 == 3
assert (H & (H - 1)) == 0    # h = row & (H-1)


# --------------------------------- kernel -----------------------------------
def double_residual_kernel(x_ref, wadd_ref, w1_ref, w2_ref, w3_ref, w4_ref,
                           m_in_ref, m_out_ref,
                           g1_ref, b1_ref, g2_ref, b2_ref,
                           g3_ref, b3_ref, g4_ref, b4_ref,
                           out_ref, pad_in_ref, pad_out_ref):
    f32 = jnp.float32

    # Zero only the pad borders once (interior is fully overwritten per conv;
    # border reads are additionally jnp.where-masked, so this is belt & braces).
    pad_in_ref[0:B0, :] = jnp.zeros((B0, WIN), f32)
    pad_in_ref[B0 + R2:PAD_ROWS, :] = jnp.zeros((B0, WIN), f32)
    pad_out_ref[0:B0, :] = jnp.zeros((B0, WOUT), f32)
    pad_out_ref[B0 + R2:PAD_ROWS, :] = jnp.zeros((B0, WOUT), f32)

    # Vertical-boundary masks, computed once and reused by every 3x3 conv.
    r_idx = lax.broadcasted_iota(jnp.int32, (R2, 1), 0)
    h_idx = lax.bitwise_and(r_idx, H - 1)
    mask_dn = h_idx > 0          # row r-1 belongs to the same image
    mask_up = h_idx < (H - 1)    # row r+1 belongs to the same image

    def bn_relu(x, m_ref, g_ref, b_ref):
        # Training-mode BatchNorm2d (batch stats, biased variance) + ReLU,
        # folded into one scale/shift FMA.  m_ref sums lanes of equal channel
        # and broadcasts the per-channel sum back to every lane of that channel.
        ch_sum = jnp.dot(x, m_ref[...], preferred_element_type=f32)
        ch_sqs = jnp.dot(x * x, m_ref[...], preferred_element_type=f32)
        mean = jnp.sum(ch_sum, axis=0, keepdims=True) * INV_COUNT
        ex2 = jnp.sum(ch_sqs, axis=0, keepdims=True) * INV_COUNT
        var = ex2 - mean * mean
        scale = g_ref[...] * lax.rsqrt(var + EPS)
        shift = b_ref[...] - mean * scale
        return jnp.maximum(x * scale + shift, 0.0)

    def conv3x3(a, w_ref, pad_ref):
        # a: (R2, W*cin).  w_ref: (3, W*cin, W*cout), one banded matrix per
        # vertical offset dh = -1, 0, +1; the horizontal taps and left/right
        # zero padding live in the band structure.
        pad_ref[B0:B0 + R2, :] = a
        dn = jnp.where(mask_dn, pad_ref[B0 - 1:B0 - 1 + R2, :], 0.0)  # a[r-1]
        up = jnp.where(mask_up, pad_ref[B0 + 1:B0 + 1 + R2, :], 0.0)  # a[r+1]
        return (jnp.dot(dn, w_ref[0], preferred_element_type=f32)
                + jnp.dot(a, w_ref[1], preferred_element_type=f32)
                + jnp.dot(up, w_ref[2], preferred_element_type=f32))

    x = x_ref[...]                                                  # (32, 64)
    a = bn_relu(x, m_in_ref, g1_ref, b1_ref)                        # bn1 + relu1
    skip = jnp.dot(a, wadd_ref[...], preferred_element_type=f32)    # conv_add 1x1
    h = conv3x3(a, w1_ref, pad_in_ref)                              # conv1
    h = bn_relu(h, m_out_ref, g2_ref, b2_ref)                       # bn2 + relu2
    h = conv3x3(h, w2_ref, pad_out_ref)                             # conv2
    h = h + skip                                                    # residual 1
    skip2 = h
    h = bn_relu(h, m_out_ref, g3_ref, b3_ref)                       # bn3 + relu3
    h = conv3x3(h, w3_ref, pad_out_ref)                             # conv3
    h = bn_relu(h, m_out_ref, g4_ref, b4_ref)                       # bn4 + relu4
    h = conv3x3(h, w4_ref, pad_out_ref)                             # conv4
    out_ref[...] = (h + skip2).astype(out_ref.dtype)                # residual 2


# -------------------- wrapper-side layout plumbing (pure JAX) ----------------
def _banded_conv_weights(w_flat, k, cin, cout):
    # w_flat: (k*k*cin, cout), tap-major (di, dj, ci).
    # Returns (k, W*cin, W*cout): for vertical tap di,
    #   B[di][w_in*cin+ci, w_out*cout+co] = K[di, w_in-w_out+p, ci, co] inside
    # the band, 0 outside (which also implements the horizontal zero padding).
    p = (k - 1) // 2
    k4 = w_flat.reshape(k, k, cin, cout)
    w_in = jnp.arange(W)[:, None]
    w_out = jnp.arange(W)[None, :]
    dj = w_in - w_out + p                                   # (W, W)
    valid = (dj >= 0) & (dj < k)
    djc = jnp.clip(dj, 0, k - 1)
    mats = []
    for di in range(k):
        blk = k4[di][djc]                                   # (W, W, cin, cout)
        blk = jnp.where(valid[:, :, None, None], blk, 0.0)
        mats.append(blk.transpose(0, 2, 1, 3).reshape(W * cin, W * cout))
    return jnp.stack(mats, axis=0)


def _block_diag_weight(w_cc, cin, cout):
    # 1x1 conv in the lane-packed layout: (W*cin, W*cout), block diagonal.
    eye = jnp.eye(W, dtype=jnp.float32)
    blk = eye[:, :, None, None] * w_cc[None, None, :, :]    # (W, W, cin, cout)
    return blk.transpose(0, 2, 1, 3).reshape(W * cin, W * cout)


def _channel_sum_matrix(c, width):
    # M[i, j] = 1 iff lane i and lane j hold the same channel (lane = w*c + ch).
    idx = jnp.arange(width)
    return (idx[:, None] % c == idx[None, :] % c).astype(jnp.float32)


def _tile_lane(v, c):
    # (1, c) per-channel vector -> (1, W*c) lane-packed row.
    return jnp.tile(jnp.reshape(v, (1, c)), (1, W))


@jax.jit
def double_residual_block(x_nchw, params):
    x = jnp.transpose(x_nchw, (0, 2, 3, 1)).astype(jnp.float32).reshape(R2, WIN)
    args = [
        x,
        _block_diag_weight(params['w_add'].reshape(C_IN, C_OUT), C_IN, C_OUT),
        _banded_conv_weights(params['w1'], K1, C_IN, C_OUT),
        _banded_conv_weights(params['w2'], K2, C_OUT, C_OUT),
        _banded_conv_weights(params['w3'], K1, C_OUT, C_OUT),
        _banded_conv_weights(params['w4'], K2, C_OUT, C_OUT),
        _channel_sum_matrix(C_IN, WIN),
        _channel_sum_matrix(C_OUT, WOUT),
        _tile_lane(params['g1'], C_IN), _tile_lane(params['b1'], C_IN),
        _tile_lane(params['g2'], C_OUT), _tile_lane(params['b2'], C_OUT),
        _tile_lane(params['g3'], C_OUT), _tile_lane(params['b3'], C_OUT),
        _tile_lane(params['g4'], C_OUT), _tile_lane(params['b4'], C_OUT),
    ]
    out_flat = pl.pallas_call(
        double_residual_kernel,
        out_shape=jax.ShapeDtypeStruct((R2, WOUT), jnp.float32),
        in_specs=[pl.BlockSpec(memory_space=pltpu.MemorySpace.VMEM)] * len(args),
        out_specs=pl.BlockSpec(memory_space=pltpu.MemorySpace.VMEM),
        scratch_shapes=[pltpu.VMEM((PAD_ROWS, WIN), jnp.float32),
                        pltpu.VMEM((PAD_ROWS, WOUT), jnp.float32)],
    )(*args)
    return jnp.transpose(out_flat.reshape(N, H, W, C_OUT), (0, 3, 1, 2))


# ---------------- pure-JAX reference (for correctness check) ----------------
def reference_forward(x_nchw, params):
    x = jnp.transpose(x_nchw, (0, 2, 3, 1)).astype(jnp.float32)  # NHWC

    def bn_relu(x, g, b):
        mean = jnp.mean(x, axis=(0, 1, 2), keepdims=True)
        var = jnp.mean((x - mean) ** 2, axis=(0, 1, 2), keepdims=True)
        return jnp.maximum((x - mean) / jnp.sqrt(var + EPS) * g + b, 0.0)

    def conv(x, w_flat, k, cin, cout, p):
        w = w_flat.reshape(k, k, cin, cout)
        return lax.conv_general_dilated(
            x, w, (1, 1), [(p, p), (p, p)],
            dimension_numbers=('NHWC', 'HWIO', 'NHWC'),
            precision=lax.Precision.HIGHEST,
            preferred_element_type=jnp.float32)

    a = bn_relu(x, params['g1'][0], params['b1'][0])
    skip = conv(a, params['w_add'], 1, C_IN, C_OUT, 0)
    h = conv(a, params['w1'], K1, C_IN, C_OUT, P1)
    h = bn_relu(h, params['g2'][0], params['b2'][0])
    h = conv(h, params['w2'], K2, C_OUT, C_OUT, P2)
    h = h + skip
    skip2 = h
    h = bn_relu(h, params['g3'][0], params['b3'][0])
    h = conv(h, params['w3'], K1, C_OUT, C_OUT, P1)
    h = bn_relu(h, params['g4'][0], params['b4'][0])
    h = conv(h, params['w4'], K2, C_OUT, C_OUT, P2)
    return jnp.transpose(h + skip2, (0, 3, 1, 2))


if __name__ == "__main__":
    key = jax.random.PRNGKey(0)
    keys = jax.random.split(key, 6)

    def kaiming(rng, k, cin, cout):
        # nn.init.kaiming_normal_: std = sqrt(2 / fan_in), fan_in = cin * k * k
        std = (2.0 / (cin * k * k)) ** 0.5
        return std * jax.random.normal(rng, (k * k * cin, cout), jnp.float32)

    params = {
        'w_add': kaiming(keys[0], 1, C_IN, C_OUT),
        'w1': kaiming(keys[1], K1, C_IN, C_OUT),
        'w2': kaiming(keys[2], K2, C_OUT, C_OUT),
        'w3': kaiming(keys[3], K1, C_OUT, C_OUT),
        'w4': kaiming(keys[4], K2, C_OUT, C_OUT),
        'g1': jnp.ones((1, C_IN), jnp.float32),
        'b1': jnp.zeros((1, C_IN), jnp.float32),
        'g2': jnp.ones((1, C_OUT), jnp.float32),
        'b2': jnp.zeros((1, C_OUT), jnp.float32),
        'g3': jnp.ones((1, C_OUT), jnp.float32),
        'b3': jnp.zeros((1, C_OUT), jnp.float32),
        'g4': jnp.ones((1, C_OUT), jnp.float32),
        'b4': jnp.zeros((1, C_OUT), jnp.float32),
    }

    x = jax.random.normal(keys[5], (N, C_IN, H, W), jnp.float32)   # NCHW input

    out = jax.block_until_ready(double_residual_block(x, params))
    ref = jax.block_until_ready(reference_forward(x, params))

    assert out.shape == (N, C_OUT, H, W), out.shape
    err = float(jnp.max(jnp.abs(out - ref)))
    assert err < 5e-3, f"max abs error vs reference: {err}"
    print("KERNEL_OK")
</pallas_src>

<mosaic_0001>
module attributes {stable_mosaic.version = 11 : i64} {
  func.func @double_residual_kernel(%arg0: memref<32x64xf32, #tpu.memory_space<vmem>>, %arg1: memref<64x128xf32, #tpu.memory_space<vmem>>, %arg2: memref<3x64x128xf32, #tpu.memory_space<vmem>>, %arg3: memref<3x128x128xf32, #tpu.memory_space<vmem>>, %arg4: memref<3x128x128xf32, #tpu.memory_space<vmem>>, %arg5: memref<3x128x128xf32, #tpu.memory_space<vmem>>, %arg6: memref<64x64xf32, #tpu.memory_space<vmem>>, %arg7: memref<128x128xf32, #tpu.memory_space<vmem>>, %arg8: memref<1x64xf32, #tpu.memory_space<vmem>>, %arg9: memref<1x64xf32, #tpu.memory_space<vmem>>, %arg10: memref<1x128xf32, #tpu.memory_space<vmem>>, %arg11: memref<1x128xf32, #tpu.memory_space<vmem>>, %arg12: memref<1x128xf32, #tpu.memory_space<vmem>>, %arg13: memref<1x128xf32, #tpu.memory_space<vmem>>, %arg14: memref<1x128xf32, #tpu.memory_space<vmem>>, %arg15: memref<1x128xf32, #tpu.memory_space<vmem>>, %arg16: memref<32x128xf32, #tpu.memory_space<vmem>>, %arg17: memref<48x64xf32, #tpu.memory_space<vmem>>, %arg18: memref<48x128xf32, #tpu.memory_space<vmem>>) attributes {dimension_semantics = [], scalar_prefetch = 0 : i64, scratch_operands = 2 : i64, tpu.core_type = #tpu.core_type<tc>} {
    %cst = arith.constant 0.000000e+00 : f32
    %0 = vector.broadcast %cst : f32 to vector<8x64xf32>
    %c0 = arith.constant 0 : index
    %c0_0 = arith.constant 0 : index
    %1 = vector.load %arg17[%c0, %c0_0] : memref<48x64xf32, #tpu.memory_space<vmem>>, vector<8x64xf32>
    tpu.vector_store %arg17[%c0, %c0_0], %0 {strides = array<i32>} : memref<48x64xf32, #tpu.memory_space<vmem>>, vector<8x64xf32>,
    %cst_1 = arith.constant 0.000000e+00 : f32
    %2 = vector.broadcast %cst_1 : f32 to vector<8x64xf32>
    %c40 = arith.constant 40 : index
    %c0_2 = arith.constant 0 : index
    %3 = vector.load %arg17[%c40, %c0_2] : memref<48x64xf32, #tpu.memory_space<vmem>>, vector<8x64xf32>
    tpu.vector_store %arg17[%c40, %c0_2], %2 {strides = array<i32>} : memref<48x64xf32, #tpu.memory_space<vmem>>, vector<8x64xf32>,
    %cst_3 = arith.constant 0.000000e+00 : f32
    %4 = vector.broadcast %cst_3 : f32 to vector<8x128xf32>
    %c0_4 = arith.constant 0 : index
    %c0_5 = arith.constant 0 : index
    %5 = vector.load %arg18[%c0_4, %c0_5] : memref<48x128xf32, #tpu.memory_space<vmem>>, vector<8x128xf32>
    tpu.vector_store %arg18[%c0_4, %c0_5], %4 {strides = array<i32>} : memref<48x128xf32, #tpu.memory_space<vmem>>, vector<8x128xf32>,
    %cst_6 = arith.constant 0.000000e+00 : f32
    %6 = vector.broadcast %cst_6 : f32 to vector<8x128xf32>
    %c40_7 = arith.constant 40 : index
    %c0_8 = arith.constant 0 : index
    %7 = vector.load %arg18[%c40_7, %c0_8] : memref<48x128xf32, #tpu.memory_space<vmem>>, vector<8x128xf32>
    tpu.vector_store %arg18[%c40_7, %c0_8], %6 {strides = array<i32>} : memref<48x128xf32, #tpu.memory_space<vmem>>, vector<8x128xf32>,
    %8 = tpu.iota {dimensions = array<i32: 0>} : vector<32x1xi32>
    %c15_i32 = arith.constant 15 : i32
    %9 = vector.broadcast %c15_i32 : i32 to vector<32x1xi32>
    %10 = arith.andi %8, %9 : vector<32x1xi32>
    %c0_i32 = arith.constant 0 : i32
    %11 = vector.broadcast %c0_i32 : i32 to vector<32x1xi32>
    %12 = arith.cmpi sgt, %10, %11 : vector<32x1xi32>
    %c15_i32_9 = arith.constant 15 : i32
    %13 = vector.broadcast %c15_i32_9 : i32 to vector<32x1xi32>
    %14 = arith.cmpi slt, %10, %13 : vector<32x1xi32>
    %c0_10 = arith.constant 0 : index
    %c0_11 = arith.constant 0 : index
    %15 = vector.load %arg0[%c0_10, %c0_11] : memref<32x64xf32, #tpu.memory_space<vmem>>, vector<32x64xf32>
    %c0_12 = arith.constant 0 : index
    %c0_13 = arith.constant 0 : index
    %16 = vector.load %arg6[%c0_12, %c0_13] : memref<64x64xf32, #tpu.memory_space<vmem>>, vector<64x64xf32>
    %cst_14 = arith.constant dense<0.000000e+00> : vector<32x64xf32>
    %17 = tpu.matmul %15, %16, %cst_14 {dimension_numbers = #tpu.dot_dimension_numbers<[1], [0], [0], [1], [0, 0, 1, 1], [], []>} : vector<32x64xf32>, vector<64x64xf32>, vector<32x64xf32> -> vector<32x64xf32>
    %18 = arith.mulf %15, %15 : vector<32x64xf32>
    %c0_15 = arith.constant 0 : index
    %c0_16 = arith.constant 0 : index
    %19 = vector.load %arg6[%c0_15, %c0_16] : memref<64x64xf32, #tpu.memory_space<vmem>>, vector<64x64xf32>
    %cst_17 = arith.constant dense<0.000000e+00> : vector<32x64xf32>
    %20 = tpu.matmul %18, %19, %cst_17 {dimension_numbers = #tpu.dot_dimension_numbers<[1], [0], [0], [1], [0, 0, 1, 1], [], []>} : vector<32x64xf32>, vector<64x64xf32>, vector<32x64xf32> -> vector<32x64xf32>
    %cst_18 = arith.constant dense<0.000000e+00> : vector<64xf32>
    %21 = vector.multi_reduction <add>, %17, %cst_18 [0] : vector<32x64xf32> to vector<64xf32>
    %22 = vector.shape_cast %21 : vector<64xf32> to vector<1x64xf32>
    %cst_19 = arith.constant 0.001953125 : f32
    %23 = vector.broadcast %cst_19 : f32 to vector<1x64xf32>
    %24 = arith.mulf %22, %23 : vector<1x64xf32>
    %cst_20 = arith.constant dense<0.000000e+00> : vector<64xf32>
    %25 = vector.multi_reduction <add>, %20, %cst_20 [0] : vector<32x64xf32> to vector<64xf32>
    %26 = vector.shape_cast %25 : vector<64xf32> to vector<1x64xf32>
    %cst_21 = arith.constant 0.001953125 : f32
    %27 = vector.broadcast %cst_21 : f32 to vector<1x64xf32>
    %28 = arith.mulf %26, %27 : vector<1x64xf32>
    %29 = arith.mulf %24, %24 : vector<1x64xf32>
    %30 = arith.subf %28, %29 : vector<1x64xf32>
    %c0_22 = arith.constant 0 : index
    %c0_23 = arith.constant 0 : index
    %31 = vector.load %arg8[%c0_22, %c0_23] : memref<1x64xf32, #tpu.memory_space<vmem>>, vector<1x64xf32>
    %cst_24 = arith.constant 9.99999974E-6 : f32
    %32 = vector.broadcast %cst_24 : f32 to vector<1x64xf32>
    %33 = arith.addf %30, %32 : vector<1x64xf32>
    %34 = math.rsqrt %33 : vector<1x64xf32>
    %35 = arith.mulf %31, %34 : vector<1x64xf32>
    %c0_25 = arith.constant 0 : index
    %c0_26 = arith.constant 0 : index
    %36 = vector.load %arg9[%c0_25, %c0_26] : memref<1x64xf32, #tpu.memory_space<vmem>>, vector<1x64xf32>
    %37 = arith.mulf %24, %35 : vector<1x64xf32>
    %38 = arith.subf %36, %37 : vector<1x64xf32>
    %39 = vector.broadcast %35 : vector<1x64xf32> to vector<32x64xf32>
    %40 = arith.mulf %15, %39 : vector<32x64xf32>
    %41 = vector.broadcast %38 : vector<1x64xf32> to vector<32x64xf32>
    %42 = arith.addf %40, %41 : vector<32x64xf32>
    %cst_27 = arith.constant 0.000000e+00 : f32
    %43 = vector.broadcast %cst_27 : f32 to vector<32x64xf32>
    %44 = arith.maximumf %42, %43 : vector<32x64xf32>
    %c0_28 = arith.constant 0 : index
    %c0_29 = arith.constant 0 : index
    %45 = vector.load %arg1[%c0_28, %c0_29] : memref<64x128xf32, #tpu.memory_space<vmem>>, vector<64x128xf32>
    %cst_30 = arith.constant dense<0.000000e+00> : vector<32x128xf32>
    %46 = tpu.matmul %44, %45, %cst_30 {dimension_numbers = #tpu.dot_dimension_numbers<[1], [0], [0], [1], [0, 0, 1, 1], [], []>} : vector<32x64xf32>, vector<64x128xf32>, vector<32x128xf32> -> vector<32x128xf32>
    %c8 = arith.constant 8 : index
    %c0_31 = arith.constant 0 : index
    %47 = vector.load %arg17[%c8, %c0_31] : memref<48x64xf32, #tpu.memory_space<vmem>>, vector<32x64xf32>
    tpu.vector_store %arg17[%c8, %c0_31], %44 {strides = array<i32>} : memref<48x64xf32, #tpu.memory_space<vmem>>, vector<32x64xf32>,
    %c7 = arith.constant 7 : index
    %c0_32 = arith.constant 0 : index
    %48 = vector.load %arg17[%c7, %c0_32] : memref<48x64xf32, #tpu.memory_space<vmem>>, vector<32x64xf32>
    %cst_33 = arith.constant 0.000000e+00 : f32
    %49 = vector.shape_cast %12 : vector<32x1xi1> to vector<32x1xi1>
    %50 = vector.broadcast %49 : vector<32x1xi1> to vector<32x64xi1>
    %51 = vector.broadcast %cst_33 : f32 to vector<32x64xf32>
    %52 = arith.select %50, %48, %51 : vector<32x64xi1>, vector<32x64xf32>
    %c9 = arith.constant 9 : index
    %c0_34 = arith.constant 0 : index
    %53 = vector.load %arg17[%c9, %c0_34] : memref<48x64xf32, #tpu.memory_space<vmem>>, vector<32x64xf32>
    %cst_35 = arith.constant 0.000000e+00 : f32
    %54 = vector.shape_cast %14 : vector<32x1xi1> to vector<32x1xi1>
    %55 = vector.broadcast %54 : vector<32x1xi1> to vector<32x64xi1>
    %56 = vector.broadcast %cst_35 : f32 to vector<32x64xf32>
    %57 = arith.select %55, %53, %56 : vector<32x64xi1>, vector<32x64xf32>
    %c0_36 = arith.constant 0 : index
    %c0_37 = arith.constant 0 : index
    %c0_38 = arith.constant 0 : index
    %58 = vector.load %arg2[%c0_36, %c0_37, %c0_38] : memref<3x64x128xf32, #tpu.memory_space<vmem>>, vector<1x64x128xf32>
    %59 = vector.shape_cast %58 : vector<1x64x128xf32> to vector<64x128xf32>
    %cst_39 = arith.constant dense<0.000000e+00> : vector<32x128xf32>
    %60 = tpu.matmul %52, %59, %cst_39 {dimension_numbers = #tpu.dot_dimension_numbers<[1], [0], [0], [1], [0, 0, 1, 1], [], []>} : vector<32x64xf32>, vector<64x128xf32>, vector<32x128xf32> -> vector<32x128xf32>
    %c1 = arith.constant 1 : index
    %c0_40 = arith.constant 0 : index
    %c0_41 = arith.constant 0 : index
    %61 = vector.load %arg2[%c1, %c0_40, %c0_41] : memref<3x64x128xf32, #tpu.memory_space<vmem>>, vector<1x64x128xf32>
    %62 = vector.shape_cast %61 : vector<1x64x128xf32> to vector<64x128xf32>
    %cst_42 = arith.constant dense<0.000000e+00> : vector<32x128xf32>
    %63 = tpu.matmul %44, %62, %cst_42 {dimension_numbers = #tpu.dot_dimension_numbers<[1], [0], [0], [1], [0, 0, 1, 1], [], []>} : vector<32x64xf32>, vector<64x128xf32>, vector<32x128xf32> -> vector<32x128xf32>
    %64 = arith.addf %60, %63 : vector<32x128xf32>
    %c2 = arith.constant 2 : index
    %c0_43 = arith.constant 0 : index
    %c0_44 = arith.constant 0 : index
    %65 = vector.load %arg2[%c2, %c0_43, %c0_44] : memref<3x64x128xf32, #tpu.memory_space<vmem>>, vector<1x64x128xf32>
    %66 = vector.shape_cast %65 : vector<1x64x128xf32> to vector<64x128xf32>
    %cst_45 = arith.constant dense<0.000000e+00> : vector<32x128xf32>
    %67 = tpu.matmul %57, %66, %cst_45 {dimension_numbers = #tpu.dot_dimension_numbers<[1], [0], [0], [1], [0, 0, 1, 1], [], []>} : vector<32x64xf32>, vector<64x128xf32>, vector<32x128xf32> -> vector<32x128xf32>
    %68 = arith.addf %64, %67 : vector<32x128xf32>
    %c0_46 = arith.constant 0 : index
    %c0_47 = arith.constant 0 : index
    %69 = vector.load %arg7[%c0_46, %c0_47] : memref<128x128xf32, #tpu.memory_space<vmem>>, vector<128x128xf32>
    %cst_48 = arith.constant dense<0.000000e+00> : vector<32x128xf32>
    %70 = tpu.matmul %68, %69, %cst_48 {dimension_numbers = #tpu.dot_dimension_numbers<[1], [0], [0], [1], [0, 0, 1, 1], [], []>} : vector<32x128xf32>, vector<128x128xf32>, vector<32x128xf32> -> vector<32x128xf32>
    %71 = arith.mulf %68, %68 : vector<32x128xf32>
    %c0_49 = arith.constant 0 : index
    %c0_50 = arith.constant 0 : index
    %72 = vector.load %arg7[%c0_49, %c0_50] : memref<128x128xf32, #tpu.memory_space<vmem>>, vector<128x128xf32>
    %cst_51 = arith.constant dense<0.000000e+00> : vector<32x128xf32>
    %73 = tpu.matmul %71, %72, %cst_51 {dimension_numbers = #tpu.dot_dimension_numbers<[1], [0], [0], [1], [0, 0, 1, 1], [], []>} : vector<32x128xf32>, vector<128x128xf32>, vector<32x128xf32> -> vector<32x128xf32>
    %cst_52 = arith.constant dense<0.000000e+00> : vector<128xf32>
    %74 = vector.multi_reduction <add>, %70, %cst_52 [0] : vector<32x128xf32> to vector<128xf32>
    %75 = vector.shape_cast %74 : vector<128xf32> to vector<1x128xf32>
    %cst_53 = arith.constant 0.001953125 : f32
    %76 = vector.broadcast %cst_53 : f32 to vector<1x128xf32>
    %77 = arith.mulf %75, %76 : vector<1x128xf32>
    %cst_54 = arith.constant dense<0.000000e+00> : vector<128xf32>
    %78 = vector.multi_reduction <add>, %73, %cst_54 [0] : vector<32x128xf32> to vector<128xf32>
    %79 = vector.shape_cast %78 : vector<128xf32> to vector<1x128xf32>
    %cst_55 = arith.constant 0.001953125 : f32
    %80 = vector.broadcast %cst_55 : f32 to vector<1x128xf32>
    %81 = arith.mulf %79, %80 : vector<1x128xf32>
    %82 = arith.mulf %77, %77 : vector<1x128xf32>
    %83 = arith.subf %81, %82 : vector<1x128xf32>
    %c0_56 = arith.constant 0 : index
    %c0_57 = arith.constant 0 : index
    %84 = vector.load %arg10[%c0_56, %c0_57] : memref<1x128xf32, #tpu.memory_space<vmem>>, vector<1x128xf32>
    %cst_58 = arith.constant 9.99999974E-6 : f32
    %85 = vector.broadcast %cst_58 : f32 to vector<1x128xf32>
    %86 = arith.addf %83, %85 : vector<1x128xf32>
    %87 = math.rsqrt %86 : vector<1x128xf32>
    %88 = arith.mulf %84, %87 : vector<1x128xf32>
    %c0_59 = arith.constant 0 : index
    %c0_60 = arith.constant 0 : index
    %89 = vector.load %arg11[%c0_59, %c0_60] : memref<1x128xf32, #tpu.memory_space<vmem>>, vector<1x128xf32>
    %90 = arith.mulf %77, %88 : vector<1x128xf32>
    %91 = arith.subf %89, %90 : vector<1x128xf32>
    %92 = vector.broadcast %88 : vector<1x128xf32> to vector<32x128xf32>
    %93 = arith.mulf %68, %92 : vector<32x128xf32>
    %94 = vector.broadcast %91 : vector<1x128xf32> to vector<32x128xf32>
    %95 = arith.addf %93, %94 : vector<32x128xf32>
    %cst_61 = arith.constant 0.000000e+00 : f32
    %96 = vector.broadcast %cst_61 : f32 to vector<32x128xf32>
    %97 = arith.maximumf %95, %96 : vector<32x128xf32>
    %c8_62 = arith.constant 8 : index
    %c0_63 = arith.constant 0 : index
    %98 = vector.load %arg18[%c8_62, %c0_63] : memref<48x128xf32, #tpu.memory_space<vmem>>, vector<32x128xf32>
    tpu.vector_store %arg18[%c8_62, %c0_63], %97 {strides = array<i32>} : memref<48x128xf32, #tpu.memory_space<vmem>>, vector<32x128xf32>,
    %c7_64 = arith.constant 7 : index
    %c0_65 = arith.constant 0 : index
    %99 = vector.load %arg18[%c7_64, %c0_65] : memref<48x128xf32, #tpu.memory_space<vmem>>, vector<32x128xf32>
    %cst_66 = arith.constant 0.000000e+00 : f32
    %100 = vector.shape_cast %12 : vector<32x1xi1> to vector<32x1xi1>
    %101 = vector.broadcast %100 : vector<32x1xi1> to vector<32x128xi1>
    %102 = vector.broadcast %cst_66 : f32 to vector<32x128xf32>
    %103 = arith.select %101, %99, %102 : vector<32x128xi1>, vector<32x128xf32>
    %c9_67 = arith.constant 9 : index
    %c0_68 = arith.constant 0 : index
    %104 = vector.load %arg18[%c9_67, %c0_68] : memref<48x128xf32, #tpu.memory_space<vmem>>, vector<32x128xf32>
    %cst_69 = arith.constant 0.000000e+00 : f32
    %105 = vector.shape_cast %14 : vector<32x1xi1> to vector<32x1xi1>
    %106 = vector.broadcast %105 : vector<32x1xi1> to vector<32x128xi1>
    %107 = vector.broadcast %cst_69 : f32 to vector<32x128xf32>
    %108 = arith.select %106, %104, %107 : vector<32x128xi1>, vector<32x128xf32>
    %c0_70 = arith.constant 0 : index
    %c0_71 = arith.constant 0 : index
    %c0_72 = arith.constant 0 : index
    %109 = vector.load %arg3[%c0_70, %c0_71, %c0_72] : memref<3x128x128xf32, #tpu.memory_space<vmem>>, vector<1x128x128xf32>
    %110 = vector.shape_cast %109 : vector<1x128x128xf32> to vector<128x128xf32>
    %cst_73 = arith.constant dense<0.000000e+00> : vector<32x128xf32>
    %111 = tpu.matmul %103, %110, %cst_73 {dimension_numbers = #tpu.dot_dimension_numbers<[1], [0], [0], [1], [0, 0, 1, 1], [], []>} : vector<32x128xf32>, vector<128x128xf32>, vector<32x128xf32> -> vector<32x128xf32>
    %c1_74 = arith.constant 1 : index
    %c0_75 = arith.constant 0 : index
    %c0_76 = arith.constant 0 : index
    %112 = vector.load %arg3[%c1_74, %c0_75, %c0_76] : memref<3x128x128xf32, #tpu.memory_space<vmem>>, vector<1x128x128xf32>
    %113 = vector.shape_cast %112 : vector<1x128x128xf32> to vector<128x128xf32>
    %cst_77 = arith.constant dense<0.000000e+00> : vector<32x128xf32>
    %114 = tpu.matmul %97, %113, %cst_77 {dimension_numbers = #tpu.dot_dimension_numbers<[1], [0], [0], [1], [0, 0, 1, 1], [], []>} : vector<32x128xf32>, vector<128x128xf32>, vector<32x128xf32> -> vector<32x128xf32>
    %115 = arith.addf %111, %114 : vector<32x128xf32>
    %c2_78 = arith.constant 2 : index
    %c0_79 = arith.constant 0 : index
    %c0_80 = arith.constant 0 : index
    %116 = vector.load %arg3[%c2_78, %c0_79, %c0_80] : memref<3x128x128xf32, #tpu.memory_space<vmem>>, vector<1x128x128xf32>
    %117 = vector.shape_cast %116 : vector<1x128x128xf32> to vector<128x128xf32>
    %cst_81 = arith.constant dense<0.000000e+00> : vector<32x128xf32>
    %118 = tpu.matmul %108, %117, %cst_81 {dimension_numbers = #tpu.dot_dimension_numbers<[1], [0], [0], [1], [0, 0, 1, 1], [], []>} : vector<32x128xf32>, vector<128x128xf32>, vector<32x128xf32> -> vector<32x128xf32>
    %119 = arith.addf %115, %118 : vector<32x128xf32>
    %120 = arith.addf %119, %46 : vector<32x128xf32>
    %c0_82 = arith.constant 0 : index
    %c0_83 = arith.constant 0 : index
    %121 = vector.load %arg7[%c0_82, %c0_83] : memref<128x128xf32, #tpu.memory_space<vmem>>, vector<128x128xf32>
    %cst_84 = arith.constant dense<0.000000e+00> : vector<32x128xf32>
    %122 = tpu.matmul %120, %121, %cst_84 {dimension_numbers = #tpu.dot_dimension_numbers<[1], [0], [0], [1], [0, 0, 1, 1], [], []>} : vector<32x128xf32>, vector<128x128xf32>, vector<32x128xf32> -> vector<32x128xf32>
    %123 = arith.mulf %120, %120 : vector<32x128xf32>
    %c0_85 = arith.constant 0 : index
    %c0_86 = arith.constant 0 : index
    %124 = vector.load %arg7[%c0_85, %c0_86] : memref<128x128xf32, #tpu.memory_space<vmem>>, vector<128x128xf32>
    %cst_87 = arith.constant dense<0.000000e+00> : vector<32x128xf32>
    %125 = tpu.matmul %123, %124, %cst_87 {dimension_numbers = #tpu.dot_dimension_numbers<[1], [0], [0], [1], [0, 0, 1, 1], [], []>} : vector<32x128xf32>, vector<128x128xf32>, vector<32x128xf32> -> vector<32x128xf32>
    %cst_88 = arith.constant dense<0.000000e+00> : vector<128xf32>
    %126 = vector.multi_reduction <add>, %122, %cst_88 [0] : vector<32x128xf32> to vector<128xf32>
    %127 = vector.shape_cast %126 : vector<128xf32> to vector<1x128xf32>
    %cst_89 = arith.constant 0.001953125 : f32
    %128 = vector.broadcast %cst_89 : f32 to vector<1x128xf32>
    %129 = arith.mulf %127, %128 : vector<1x128xf32>
    %cst_90 = arith.constant dense<0.000000e+00> : vector<128xf32>
    %130 = vector.multi_reduction <add>, %125, %cst_90 [0] : vector<32x128xf32> to vector<128xf32>
    %131 = vector.shape_cast %130 : vector<128xf32> to vector<1x128xf32>
    %cst_91 = arith.constant 0.001953125 : f32
    %132 = vector.broadcast %cst_91 : f32 to vector<1x128xf32>
    %133 = arith.mulf %131, %132 : vector<1x128xf32>
    %134 = arith.mulf %129, %129 : vector<1x128xf32>
    %135 = arith.subf %133, %134 : vector<1x128xf32>
    %c0_92 = arith.constant 0 : index
    %c0_93 = arith.constant 0 : index
    %136 = vector.load %arg12[%c0_92, %c0_93] : memref<1x128xf32, #tpu.memory_space<vmem>>, vector<1x128xf32>
    %cst_94 = arith.constant 9.99999974E-6 : f32
    %137 = vector.broadcast %cst_94 : f32 to vector<1x128xf32>
    %138 = arith.addf %135, %137 : vector<1x128xf32>
    %139 = math.rsqrt %138 : vector<1x128xf32>
    %140 = arith.mulf %136, %139 : vector<1x128xf32>
    %c0_95 = arith.constant 0 : index
    %c0_96 = arith.constant 0 : index
    %141 = vector.load %arg13[%c0_95, %c0_96] : memref<1x128xf32, #tpu.memory_space<vmem>>, vector<1x128xf32>
    %142 = arith.mulf %129, %140 : vector<1x128xf32>
    %143 = arith.subf %141, %142 : vector<1x128xf32>
    %144 = vector.broadcast %140 : vector<1x128xf32> to vector<32x128xf32>
    %145 = arith.mulf %120, %144 : vector<32x128xf32>
    %146 = vector.broadcast %143 : vector<1x128xf32> to vector<32x128xf32>
    %147 = arith.addf %145, %146 : vector<32x128xf32>
    %cst_97 = arith.constant 0.000000e+00 : f32
    %148 = vector.broadcast %cst_97 : f32 to vector<32x128xf32>
    %149 = arith.maximumf %147, %148 : vector<32x128xf32>
    %c8_98 = arith.constant 8 : index
    %c0_99 = arith.constant 0 : index
    %150 = vector.load %arg18[%c8_98, %c0_99] : memref<48x128xf32, #tpu.memory_space<vmem>>, vector<32x128xf32>
    tpu.vector_store %arg18[%c8_98, %c0_99], %149 {strides = array<i32>} : memref<48x128xf32, #tpu.memory_space<vmem>>, vector<32x128xf32>,
    %c7_100 = arith.constant 7 : index
    %c0_101 = arith.constant 0 : index
    %151 = vector.load %arg18[%c7_100, %c0_101] : memref<48x128xf32, #tpu.memory_space<vmem>>, vector<32x128xf32>
    %cst_102 = arith.constant 0.000000e+00 : f32
    %152 = vector.shape_cast %12 : vector<32x1xi1> to vector<32x1xi1>
    %153 = vector.broadcast %152 : vector<32x1xi1> to vector<32x128xi1>
    %154 = vector.broadcast %cst_102 : f32 to vector<32x128xf32>
    %155 = arith.select %153, %151, %154 : vector<32x128xi1>, vector<32x128xf32>
    %c9_103 = arith.constant 9 : index
    %c0_104 = arith.constant 0 : index
    %156 = vector.load %arg18[%c9_103, %c0_104] : memref<48x128xf32, #tpu.memory_space<vmem>>, vector<32x128xf32>
    %cst_105 = arith.constant 0.000000e+00 : f32
    %157 = vector.shape_cast %14 : vector<32x1xi1> to vector<32x1xi1>
    %158 = vector.broadcast %157 : vector<32x1xi1> to vector<32x128xi1>
    %159 = vector.broadcast %cst_105 : f32 to vector<32x128xf32>
    %160 = arith.select %158, %156, %159 : vector<32x128xi1>, vector<32x128xf32>
    %c0_106 = arith.constant 0 : index
    %c0_107 = arith.constant 0 : index
    %c0_108 = arith.constant 0 : index
    %161 = vector.load %arg4[%c0_106, %c0_107, %c0_108] : memref<3x128x128xf32, #tpu.memory_space<vmem>>, vector<1x128x128xf32>
    %162 = vector.shape_cast %161 : vector<1x128x128xf32> to vector<128x128xf32>
    %cst_109 = arith.constant dense<0.000000e+00> : vector<32x128xf32>
    %163 = tpu.matmul %155, %162, %cst_109 {dimension_numbers = #tpu.dot_dimension_numbers<[1], [0], [0], [1], [0, 0, 1, 1], [], []>} : vector<32x128xf32>, vector<128x128xf32>, vector<32x128xf32> -> vector<32x128xf32>
    %c1_110 = arith.constant 1 : index
    %c0_111 = arith.constant 0 : index
    %c0_112 = arith.constant 0 : index
    %164 = vector.load %arg4[%c1_110, %c0_111, %c0_112] : memref<3x128x128xf32, #tpu.memory_space<vmem>>, vector<1x128x128xf32>
    %165 = vector.shape_cast %164 : vector<1x128x128xf32> to vector<128x128xf32>
    %cst_113 = arith.constant dense<0.000000e+00> : vector<32x128xf32>
    %166 = tpu.matmul %149, %165, %cst_113 {dimension_numbers = #tpu.dot_dimension_numbers<[1], [0], [0], [1], [0, 0, 1, 1], [], []>} : vector<32x128xf32>, vector<128x128xf32>, vector<32x128xf32> -> vector<32x128xf32>
    %167 = arith.addf %163, %166 : vector<32x128xf32>
    %c2_114 = arith.constant 2 : index
    %c0_115 = arith.constant 0 : index
    %c0_116 = arith.constant 0 : index
    %168 = vector.load %arg4[%c2_114, %c0_115, %c0_116] : memref<3x128x128xf32, #tpu.memory_space<vmem>>, vector<1x128x128xf32>
    %169 = vector.shape_cast %168 : vector<1x128x128xf32> to vector<128x128xf32>
    %cst_117 = arith.constant dense<0.000000e+00> : vector<32x128xf32>
    %170 = tpu.matmul %160, %169, %cst_117 {dimension_numbers = #tpu.dot_dimension_numbers<[1], [0], [0], [1], [0, 0, 1, 1], [], []>} : vector<32x128xf32>, vector<128x128xf32>, vector<32x128xf32> -> vector<32x128xf32>
    %171 = arith.addf %167, %170 : vector<32x128xf32>
    %c0_118 = arith.constant 0 : index
    %c0_119 = arith.constant 0 : index
    %172 = vector.load %arg7[%c0_118, %c0_119] : memref<128x128xf32, #tpu.memory_space<vmem>>, vector<128x128xf32>
    %cst_120 = arith.constant dense<0.000000e+00> : vector<32x128xf32>
    %173 = tpu.matmul %171, %172, %cst_120 {dimension_numbers = #tpu.dot_dimension_numbers<[1], [0], [0], [1], [0, 0, 1, 1], [], []>} : vector<32x128xf32>, vector<128x128xf32>, vector<32x128xf32> -> vector<32x128xf32>
    %174 = arith.mulf %171, %171 : vector<32x128xf32>
    %c0_121 = arith.constant 0 : index
    %c0_122 = arith.constant 0 : index
    %175 = vector.load %arg7[%c0_121, %c0_122] : memref<128x128xf32, #tpu.memory_space<vmem>>, vector<128x128xf32>
    %cst_123 = arith.constant dense<0.000000e+00> : vector<32x128xf32>
    %176 = tpu.matmul %174, %175, %cst_123 {dimension_numbers = #tpu.dot_dimension_numbers<[1], [0], [0], [1], [0, 0, 1, 1], [], []>} : vector<32x128xf32>, vector<128x128xf32>, vector<32x128xf32> -> vector<32x128xf32>
    %cst_124 = arith.constant dense<0.000000e+00> : vector<128xf32>
    %177 = vector.multi_reduction <add>, %173, %cst_124 [0] : vector<32x128xf32> to vector<128xf32>
    %178 = vector.shape_cast %177 : vector<128xf32> to vector<1x128xf32>
    %cst_125 = arith.constant 0.001953125 : f32
    %179 = vector.broadcast %cst_125 : f32 to vector<1x128xf32>
    %180 = arith.mulf %178, %179 : vector<1x128xf32>
    %cst_126 = arith.constant dense<0.000000e+00> : vector<128xf32>
    %181 = vector.multi_reduction <add>, %176, %cst_126 [0] : vector<32x128xf32> to vector<128xf32>
    %182 = vector.shape_cast %181 : vector<128xf32> to vector<1x128xf32>
    %cst_127 = arith.constant 0.001953125 : f32
    %183 = vector.broadcast %cst_127 : f32 to vector<1x128xf32>
    %184 = arith.mulf %182, %183 : vector<1x128xf32>
    %185 = arith.mulf %180, %180 : vector<1x128xf32>
    %186 = arith.subf %184, %185 : vector<1x128xf32>
    %c0_128 = arith.constant 0 : index
    %c0_129 = arith.constant 0 : index
    %187 = vector.load %arg14[%c0_128, %c0_129] : memref<1x128xf32, #tpu.memory_space<vmem>>, vector<1x128xf32>
    %cst_130 = arith.constant 9.99999974E-6 : f32
    %188 = vector.broadcast %cst_130 : f32 to vector<1x128xf32>
    %189 = arith.addf %186, %188 : vector<1x128xf32>
    %190 = math.rsqrt %189 : vector<1x128xf32>
    %191 = arith.mulf %187, %190 : vector<1x128xf32>
    %c0_131 = arith.constant 0 : index
    %c0_132 = arith.constant 0 : index
    %192 = vector.load %arg15[%c0_131, %c0_132] : memref<1x128xf32, #tpu.memory_space<vmem>>, vector<1x128xf32>
    %193 = arith.mulf %180, %191 : vector<1x128xf32>
    %194 = arith.subf %192, %193 : vector<1x128xf32>
    %195 = vector.broadcast %191 : vector<1x128xf32> to vector<32x128xf32>
    %196 = arith.mulf %171, %195 : vector<32x128xf32>
    %197 = vector.broadcast %194 : vector<1x128xf32> to vector<32x128xf32>
    %198 = arith.addf %196, %197 : vector<32x128xf32>
    %cst_133 = arith.constant 0.000000e+00 : f32
    %199 = vector.broadcast %cst_133 : f32 to vector<32x128xf32>
    %200 = arith.maximumf %198, %199 : vector<32x128xf32>
    %c8_134 = arith.constant 8 : index
    %c0_135 = arith.constant 0 : index
    %201 = vector.load %arg18[%c8_134, %c0_135] : memref<48x128xf32, #tpu.memory_space<vmem>>, vector<32x128xf32>
    tpu.vector_store %arg18[%c8_134, %c0_135], %200 {strides = array<i32>} : memref<48x128xf32, #tpu.memory_space<vmem>>, vector<32x128xf32>,
    %c7_136 = arith.constant 7 : index
    %c0_137 = arith.constant 0 : index
    %202 = vector.load %arg18[%c7_136, %c0_137] : memref<48x128xf32, #tpu.memory_space<vmem>>, vector<32x128xf32>
    %cst_138 = arith.constant 0.000000e+00 : f32
    %203 = vector.shape_cast %12 : vector<32x1xi1> to vector<32x1xi1>
    %204 = vector.broadcast %203 : vector<32x1xi1> to vector<32x128xi1>
    %205 = vector.broadcast %cst_138 : f32 to vector<32x128xf32>
    %206 = arith.select %204, %202, %205 : vector<32x128xi1>, vector<32x128xf32>
    %c9_139 = arith.constant 9 : index
    %c0_140 = arith.constant 0 : index
    %207 = vector.load %arg18[%c9_139, %c0_140] : memref<48x128xf32, #tpu.memory_space<vmem>>, vector<32x128xf32>
    %cst_141 = arith.constant 0.000000e+00 : f32
    %208 = vector.shape_cast %14 : vector<32x1xi1> to vector<32x1xi1>
    %209 = vector.broadcast %208 : vector<32x1xi1> to vector<32x128xi1>
    %210 = vector.broadcast %cst_141 : f32 to vector<32x128xf32>
    %211 = arith.select %209, %207, %210 : vector<32x128xi1>, vector<32x128xf32>
    %c0_142 = arith.constant 0 : index
    %c0_143 = arith.constant 0 : index
    %c0_144 = arith.constant 0 : index
    %212 = vector.load %arg5[%c0_142, %c0_143, %c0_144] : memref<3x128x128xf32, #tpu.memory_space<vmem>>, vector<1x128x128xf32>
    %213 = vector.shape_cast %212 : vector<1x128x128xf32> to vector<128x128xf32>
    %cst_145 = arith.constant dense<0.000000e+00> : vector<32x128xf32>
    %214 = tpu.matmul %206, %213, %cst_145 {dimension_numbers = #tpu.dot_dimension_numbers<[1], [0], [0], [1], [0, 0, 1, 1], [], []>} : vector<32x128xf32>, vector<128x128xf32>, vector<32x128xf32> -> vector<32x128xf32>
    %c1_146 = arith.constant 1 : index
    %c0_147 = arith.constant 0 : index
    %c0_148 = arith.constant 0 : index
    %215 = vector.load %arg5[%c1_146, %c0_147, %c0_148] : memref<3x128x128xf32, #tpu.memory_space<vmem>>, vector<1x128x128xf32>
    %216 = vector.shape_cast %215 : vector<1x128x128xf32> to vector<128x128xf32>
    %cst_149 = arith.constant dense<0.000000e+00> : vector<32x128xf32>
    %217 = tpu.matmul %200, %216, %cst_149 {dimension_numbers = #tpu.dot_dimension_numbers<[1], [0], [0], [1], [0, 0, 1, 1], [], []>} : vector<32x128xf32>, vector<128x128xf32>, vector<32x128xf32> -> vector<32x128xf32>
    %218 = arith.addf %214, %217 : vector<32x128xf32>
    %c2_150 = arith.constant 2 : index
    %c0_151 = arith.constant 0 : index
    %c0_152 = arith.constant 0 : index
    %219 = vector.load %arg5[%c2_150, %c0_151, %c0_152] : memref<3x128x128xf32, #tpu.memory_space<vmem>>, vector<1x128x128xf32>
    %220 = vector.shape_cast %219 : vector<1x128x128xf32> to vector<128x128xf32>
    %cst_153 = arith.constant dense<0.000000e+00> : vector<32x128xf32>
    %221 = tpu.matmul %211, %220, %cst_153 {dimension_numbers = #tpu.dot_dimension_numbers<[1], [0], [0], [1], [0, 0, 1, 1], [], []>} : vector<32x128xf32>, vector<128x128xf32>, vector<32x128xf32> -> vector<32x128xf32>
    %222 = arith.addf %218, %221 : vector<32x128xf32>
    %223 = arith.addf %222, %120 : vector<32x128xf32>
    %c0_154 = arith.constant 0 : index
    %c0_155 = arith.constant 0 : index
    %224 = vector.load %arg16[%c0_154, %c0_155] : memref<32x128xf32, #tpu.memory_space<vmem>>, vector<32x128xf32>
    tpu.vector_store %arg16[%c0_154, %c0_155], %223 {strides = array<i32>} : memref<32x128xf32, #tpu.memory_space<vmem>>, vector<32x128xf32>,
    return
  }
}

</mosaic_0001>

<bundles_post_ra>
// kernel: squeeze.12
= control target key start
LH: loop header
LB: loop body
LE: loop exit
PB: predicated region body
PF: predicated region fallthrough
CT: control target
= control target key end

     0   :  { %vm3_vm0 = vcmask 64512   ;;  %s58_s0 = inlined_call_operand.vmem [shape: f32[12,8], index: 0, kind: input, shape index: {}]   ;;  %s59_s1 = inlined_call_operand.vmem [shape: f32[3,4,8], index: 1, kind: output, shape index: {}]  }
   0x1   :  { %v2_v0 = vld [vmem:[%s58_s0] sm:$0xff]   ;;  %v30_v1 = vld [vmem:[%s58_s0 + $0x8] sm:$0xf]  }
   0x2   :  { %4 = vst.msk [vmem:[#allocation0] sm:$0xf] %vm3_vm0, %v2_v0  }
   0x3   :  { %6 = vst.msk [vmem:[#allocation0 + $0x4] sm:$0xf0] %vm3_vm0, %v2_v0  }
   0x4   :  { %11 = vst.msk [vmem:[#allocation0 + $0x10] sm:$0xf] %vm3_vm0, %v30_v1  }
   0x9   :  { %v14_v2 = vld [vmem:[#allocation0] sm:$0xf] }
   0xa   :  { %17 = vst [vmem:[%s59_s1] sm:$0xf] %v14_v2  ;;  %v19_v3 = vld [vmem:[#allocation0 + $0x8] sm:$0xf] }
   0xb   :  { %31 = vst [vmem:[%s59_s1 + $0x4] sm:$0xf] %v19_v3  ;;  %v25_v4 = vld [vmem:[#allocation0 + $0x10] sm:$0xf] }
   0xc   :  { %32 = vst [vmem:[%s59_s1 + $0x8] sm:$0xf] %v25_v4 }

// kernel: double_residual_block.1
= control target key start
LH: loop header
LB: loop body
LE: loop exit
PB: predicated region body
PF: predicated region fallthrough
CT: control target
= control target key end

     0   :  { %vm53_vm0 = vcmask 523264   ;;  %s2667_s6 = inlined_call_operand.vmem [shape: f32[64,64], index: 6, kind: input, shape index: {}]   ;;  %s2668_s0 = inlined_call_operand.vmem [shape: f32[32,64], index: 0, kind: input, shape index: {}]   ;;  %s2669_s2 = inlined_call_operand.vmem [shape: f32[3,64,128], index: 2, kind: input, shape index: {}]   ;;  %s2670_s1 = inlined_call_operand.vmem [shape: f32[64,128], index: 1, kind: input, shape index: {}]   ;;  %s2671_s8 = inlined_call_operand.vmem [shape: f32[1,64], index: 8, kind: input, shape index: {}]   ;;  %s2672_s9 = inlined_call_operand.vmem [shape: f32[1,64], index: 9, kind: input, shape index: {}]   ;;  %s2673_s7 = inlined_call_operand.vmem [shape: f32[128,128], index: 7, kind: input, shape index: {}]   ;;  %s2674_s3 = inlined_call_operand.vmem [shape: f32[3,128,128], index: 3, kind: input, shape index: {}]   ;;  %s2675_s10 = inlined_call_operand.vmem [shape: f32[1,128], index: 10, kind: input, shape index: {}]   ;;  %s2676_s11 = inlined_call_operand.vmem [shape: f32[1,128], index: 11, kind: input, shape index: {}]   ;;  %s2677_s4 = inlined_call_operand.vmem [shape: f32[3,128,128], index: 4, kind: input, shape index: {}]   ;;  %s2678_s12 = inlined_call_operand.vmem [shape: f32[1,128], index: 12, kind: input, shape index: {}]   ;;  %s2679_s13 = inlined_call_operand.vmem [shape: f32[1,128], index: 13, kind: input, shape index: {}]   ;;  %s2680_s5 = inlined_call_operand.vmem [shape: f32[3,128,128], index: 5, kind: input, shape index: {}]   ;;  %s2681_s14 = inlined_call_operand.vmem [shape: f32[1,128], index: 14, kind: input, shape index: {}]   ;;  %s2682_s15 = inlined_call_operand.vmem [shape: f32[1,128], index: 15, kind: input, shape index: {}]   ;;  %s2683_s16 = inlined_call_operand.vmem [shape: f32[32,128], index: 16, kind: output, shape index: {}]  }
   0x1   :  { %2685 = sst [smem:[#allocation4_spill]] %s2667_s6  ;;  %v1658_v8 = vld [vmem:[%s2668_s0] sm:$0xff]  ;;  %v1663_v9 = vld [vmem:[%s2668_s0 + $0x10] sm:$0xff]  ;;  %v1672_v10 = vld [vmem:[%s2668_s0 + $0x8] sm:$0xff] }
   0x2   :  { %s2686_s23 = sld [smem:[#allocation4_spill]]  ;;  %v1677_v11 = vld [vmem:[%s2668_s0 + $0x18] sm:$0xff]  ;;  %v128_v12 = vmul.f32 %v1658_v8, %v1658_v8  ;;  %v129_v13 = vmul.f32 %v1672_v10, %v1672_v10  ;;  %v130_v14 = vmul.f32 %v1663_v9, %v1663_v9  ;;  %v1398_v47 = vld [vmem:[%s2669_s2 + $0xb0] sm:$0xff]  ;;  %v242_v51 = vld [vmem:[%s2670_s1 + $0x28] sm:$0xff] }
   0x3   :  { %v131_v15 = vmul.f32 %v1677_v11, %v1677_v11  ;;  %v244_v44 = vld [vmem:[%s2670_s1 + $0x38] sm:$0xff]  ;;  %v243_v48 = vld [vmem:[%s2670_s1 + $0x30] sm:$0xff]  ;;  %v1397_v52 = vld [vmem:[%s2669_s2 + $0xa8] sm:$0xff] }
   0x4   :  { %v1383_v45 = vld [vmem:[%s2669_s2 + $0x78] sm:$0xff]  ;;  %265 = vmatpush.msra.mxu2 %v244_v44  ;;  %v1382_v50 = vld [vmem:[%s2669_s2 + $0x70] sm:$0xff]  ;;  %v1381_v53 = vld [vmem:[%s2669_s2 + $0x68] sm:$0xff] }
   0x5   :  { %v1399_v46 = vld [vmem:[%s2669_s2 + $0xb8] sm:$0xff]  ;;  %347 = vmatpush.msra.mxu3 %v1383_v45  ;;  %v241_v56 = vld [vmem:[%s2670_s1 + $0x20] sm:$0xff]  ;;  %v328_v63 = vld [vmem:[%s2669_s2 + $0x30] sm:$0xff] }
   0x6   :  { %266 = vmatpush.msra.mxu2 %v243_v48  ;;  %v1380_v57 = vld [vmem:[%s2669_s2 + $0x60] sm:$0xff]  ;;  %v329_v59 = vld [vmem:[%s2669_s2 + $0x38] sm:$0xff] }
   0x7   :  { %348 = vmatpush.msra.mxu3 %v1382_v50  ;;  %v1396_v58 = vld [vmem:[%s2669_s2 + $0xa0] sm:$0xff]  ;;  %v240_v61 = vld [vmem:[%s2670_s1 + $0x18] sm:$0xff] }
   0x8   :  { %v86_v0 = vld [vmem:[%s2686_s23 + $0x38] sm:$0xff]  ;;  %v85_v1 = vld [vmem:[%s2686_s23 + $0x30] sm:$0xff]  ;;  %v84_v2 = vld [vmem:[%s2686_s23 + $0x28] sm:$0xff]  ;;  %267 = vmatpush.msra.mxu2 %v242_v51 }
   0x9   :  { %107 = vmatpush.msra.mxu0 %v86_v0  ;;  %1512 = vmatpush.msra.mxu1 %v86_v0  ;;  %v83_v3 = vld [vmem:[%s2686_s23 + $0x20] sm:$0xff]  ;;  %v82_v4 = vld [vmem:[%s2686_s23 + $0x18] sm:$0xff]  ;;  %v81_v5 = vld [vmem:[%s2686_s23 + $0x10] sm:$0xff] }
   0xa   :  { %v80_v6 = vld [vmem:[%s2686_s23 + $0x8] sm:$0xff]  ;;  %v79_v7 = vld [vmem:[%s2686_s23] sm:$0xff]  ;;  %349 = vmatpush.msra.mxu3 %v1381_v53  ;;  %v1379_v62 = vld [vmem:[%s2669_s2 + $0x58] sm:$0xff]  ;;  %268 = vmatpush.msra.mxu2 %v241_v56 }
   0xb   :  { %108 = vmatpush.msra.mxu0 %v85_v1  ;;  %1513 = vmatpush.msra.mxu1 %v85_v1 }
   0xc   :  { %350 = vmatpush.msra.mxu3 %v1380_v57  ;;  %269 = vmatpush.msra.mxu2 %v240_v61 }
   0xd   :  { %109 = vmatpush.msra.mxu0 %v84_v2  ;;  %1514 = vmatpush.msra.mxu1 %v84_v2 }
   0xe   :  { %351 = vmatpush.msra.mxu3 %v1379_v62 }
   0xf   :  { %110 = vmatpush.msra.mxu0 %v83_v3  ;;  %1515 = vmatpush.msra.mxu1 %v83_v3 }
  0x11   :  { %111 = vmatpush.msra.mxu0 %v82_v4  ;;  %1516 = vmatpush.msra.mxu1 %v82_v4 }
  0x13   :  { %112 = vmatpush.msra.mxu0 %v81_v5  ;;  %1517 = vmatpush.msra.mxu1 %v81_v5 }
  0x15   :  { %113 = vmatpush.msra.mxu0 %v80_v6  ;;  %1518 = vmatpush.msra.mxu1 %v80_v6 }
  0x17   :  { %114 = vmatpush.msra.mxu0 %v79_v7  ;;  %1519 = vmatpush.msra.mxu1 %v79_v7 }
  0x18   :  { %1364 = vmatmul.msk.f32.vlgmr.msra.gmra.mxu0 %vm53_vm0, %v1658_v8  ;;  %1366 = vmatmul.msk.f32.vlgmr.msra.gmra.mxu1 %vm53_vm0, %v1663_v9 }
  0x19   :  { %152 = vmatpush.msrb.mxu1 %v86_v0  ;;  %388 = vmatpush.msrb.mxu0 %v329_v59  ;;  %v1395_v0 = vld [vmem:[%s2669_s2 + $0x98] sm:$0xff]  ;;  %v1845_v59 = vld [vmem:[%s2673_s7 + $0x60] sm:$0xff] }
  0x1b   :  { %153 = vmatpush.msrb.mxu1 %v85_v1  ;;  %v327_v1 = vld [vmem:[%s2669_s2 + $0x28] sm:$0xff]  ;;  %389 = vmatpush.msrb.mxu0 %v328_v63  ;;  %v1856_v63 = vld [vmem:[%s2673_s7 + $0x58] sm:$0xff] }
  0x1d   :  { %154 = vmatpush.msrb.mxu1 %v84_v2  ;;  %390 = vmatpush.msrb.mxu0 %v327_v1 }
  0x1f   :  { %155 = vmatpush.msrb.mxu1 %v83_v3 }
  0x20   :  { %1365 = vmatmul.msk.f32.gmra.mxu0 %vm53_vm0, %v1672_v10  ;;  %1367 = vmatmul.msk.f32.gmra.mxu1 %vm53_vm0, %v1677_v11 }
  0x21   :  { %156 = vmatpush.msrb.mxu1 %v82_v4  ;;  %v239_v4 = vld [vmem:[%s2670_s1 + $0x10] sm:$0xff] }
  0x22   :  { %270 = vmatpush.msra.mxu2 %v239_v4  ;;  %v1876_v4 = vld [vmem:[%s2673_s7 + $0x48] sm:$0xff] }
  0x23   :  { %157 = vmatpush.msrb.mxu1 %v81_v5  ;;  %v1378_v5 = vld [vmem:[%s2669_s2 + $0x50] sm:$0xff] }
  0x24   :  { %352 = vmatpush.msra.mxu3 %v1378_v5 }
  0x25   :  { %158 = vmatpush.msrb.mxu1 %v80_v6  ;;  %v326_v6 = vld [vmem:[%s2669_s2 + $0x20] sm:$0xff] }
  0x26   :  { %391 = vmatpush.msrb.mxu0 %v326_v6 }
  0x27   :  { %159 = vmatpush.msrb.mxu1 %v79_v7  ;;  %v1394_v7 = vld [vmem:[%s2669_s2 + $0x90] sm:$0xff] }
  0x28   :  { %1368 = vmatmul.msk.f32.vlgmr.msrb.gmra.mxu1 %vm53_vm0, %v128_v12 }
  0x29   :  { %438 = vmatpush.msra.mxu1 %v1399_v46  ;;  %v58_v46 = vlaneseq }
  0x2b   :  { %439 = vmatpush.msra.mxu1 %v1398_v47 }
  0x2d   :  { %440 = vmatpush.msra.mxu1 %v1397_v52 }
  0x2f   :  { %441 = vmatpush.msra.mxu1 %v1396_v58 }
  0x30   :  { %1369 = vmatmul.msk.f32.gmra.mxu1 %vm53_vm0, %v129_v13  ;;  %v238_v13 = vld [vmem:[%s2670_s1 + $0x8] sm:$0xff] }
  0x31   :  { %442 = vmatpush.msra.mxu1 %v1395_v0  ;;  %271 = vmatpush.msra.mxu2 %v238_v13  ;;  %v1863_v0 = vld [vmem:[%s2673_s7 + $0x50] sm:$0xff]  ;;  %v1894_v13 = vld [vmem:[%s2673_s7 + $0x38] sm:$0xff] }
  0x33   :  { %443 = vmatpush.msra.mxu1 %v1394_v7 }
  0x38   :  { %1370 = vmatmul.msk.f32.gmra.mxu1 %vm53_vm0, %v130_v14  ;;  %v1377_v14 = vld [vmem:[%s2669_s2 + $0x48] sm:$0xff] }
  0x39   :  { %353 = vmatpush.msra.mxu3 %v1377_v14 }
  0x40   :  { %1371 = vmatmul.msk.f32.gmra.mxu1 %vm53_vm0, %v131_v15 }
  0x95   :  { %v116_v16 = vpop.f32.mrf.mxu0  ;;  %v122_v17 = vpop.f32.mrf.mxu1 }
  0x96   :  { %v173_v20 = vsel %vm53_vm0, %v116_v16, 0.0  ;;  %v176_v24 = vsel %vm53_vm0, %v122_v17, 0.0  ;;  %v237_v17 = vld [vmem:[%s2670_s1] sm:$0xff] }
  0x97   :  { %272 = vmatpush.msra.mxu2 %v237_v17  ;;  %v1907_v17 = vld [vmem:[%s2673_s7 + $0x30] sm:$0xff] }
  0x9d   :  { %v125_v18 = vpop.f32.mrf.mxu1  ;;  %v119_v19 = vpop.f32.mrf.mxu0 }
  0x9e   :  { %v174_v21 = vsel %vm53_vm0, %v119_v19, 0.0  ;;  %v178_v26 = vsel %vm53_vm0, %v125_v18, 0.0  ;;  %v1376_v18 = vld [vmem:[%s2669_s2 + $0x40] sm:$0xff] }
  0x9f   :  { %v175_v22 = vadd.f32 %v174_v21, %v173_v20  ;;  %354 = vmatpush.msra.mxu3 %v1376_v18  ;;  %v325_v21 = vld [vmem:[%s2669_s2 + $0x18] sm:$0xff] }
  0xa0   :  { %392 = vmatpush.msrb.mxu0 %v325_v21  ;;  %v1918_v21 = vld [vmem:[%s2673_s7 + $0x28] sm:$0xff] }
  0xa1   :  { %v177_v25 = vadd.f32 %v176_v24, %v175_v22  ;;  %v324_v22 = vld [vmem:[%s2669_s2 + $0x10] sm:$0xff]  ;;  %v1392_v24 = vld [vmem:[%s2669_s2 + $0x80] sm:$0xff] }
  0xa2   :  { %393 = vmatpush.msrb.mxu0 %v324_v22  ;;  %v1925_v22 = vld [vmem:[%s2673_s7 + $0x20] sm:$0xff] }
  0xa3   :  { %v179_v27 = vadd.f32 %v178_v26, %v177_v25  ;;  %v1545_v25 = vmov 0.0   ;;  %v323_v26 = vld [vmem:[%s2669_s2 + $0x8] sm:$0xff] }
  0xa4   :  { %54 = vst.msk [vmem:[#allocation2] sm:$0xff] %vm53_vm0, %v1545_v25  ;;  %394 = vmatpush.msrb.mxu0 %v323_v26 }
  0xa5   :  { %v161_v23 = vpop.f32.mrf.mxu1  ;;  %v180_v29 = vrot.slane %v179_v27, 4  ;;  %55 = vst.msk [vmem:[#allocation2 + $0x28] sm:$0xff] %vm53_vm0, %v1545_v25 }
  0xa6   :  { %v187_v34 = vsel %vm53_vm0, %v161_v23, 0.0  ;;  %v1393_v23 = vld [vmem:[%s2669_s2 + $0x88] sm:$0xff]  ;;  %56 = vst [vmem:[#allocation3] sm:$0xff] %v1545_v25 }
  0xa7   :  { %v181_v30 = vadd.f32 %v180_v29, %v179_v27  ;;  %444 = vmatpush.msra.mxu1 %v1393_v23  ;;  %v322_v27 = vld [vmem:[%s2669_s2] sm:$0xff]  ;;  %57 = vst [vmem:[#allocation3 + $0x28] sm:$0xff] %v1545_v25 }
  0xa8   :  { %395 = vmatpush.msrb.mxu0 %v322_v27  ;;  %v1942_v27 = vld [vmem:[%s2673_s7 + $0x18] sm:$0xff] }
  0xa9   :  { %v182_v33 = vrot.slane %v181_v30, 2  ;;  %445 = vmatpush.msra.mxu1 %v1392_v24 }
  0xab   :  { %v183_v37 = vadd.f32 %v182_v33, %v181_v30 }
  0xad   :  { %v164_v28 = vpop.f32.mrf.mxu1  ;;  %v184_v42 = vrot.slane %v183_v37, 1 }
  0xae   :  { %v188_v32 = vsel %vm53_vm0, %v164_v28, 0.0 }
  0xaf   :  { %v189_v36 = vadd.f32 %v188_v32, %v187_v34  ;;  %v185_v54 = vadd.f32 %v184_v42, %v183_v37  ;;  %v203_v34 = vld [vmem:[%s2671_s8] sm:$0x1] }
  0xb0   :  { %v216_v37 = vld [vmem:[%s2672_s9] sm:$0x1] }
  0xb1   :  { %v186_v2 = vmul.f32 0.001953125, %v185_v54  ;;  %v59_v54 = vshrl.u32 %v58_v46, 7 }
  0xb3   :  { %v201_v15 = vmul.f32 %v186_v2, %v186_v2  ;;  %v60_v57 = vadd.s32 8, %v59_v54 }
  0xb5   :  { %v167_v31 = vpop.f32.mrf.mxu1  ;;  %v64_v62 = vand.u32 15, %v60_v57 }
  0xb6   :  { %v190_v35 = vsel %vm53_vm0, %v167_v31, 0.0 }
  0xb7   :  { %v191_v38 = vadd.f32 %v190_v35, %v189_v36  ;;  %vm1867_vm5 = vcmp.lt.s32.totalorder %v64_v62, 15 }
  0xbd   :  { %v170_v39 = vpop.f32.mrf.mxu1 }
  0xbe   :  { %v192_v40 = vsel %vm53_vm0, %v170_v39, 0.0 }
  0xbf   :  { %v193_v41 = vadd.f32 %v192_v40, %v191_v38 }
  0xc1   :  { %v194_v43 = vrot.slane %v193_v41, 4 }
  0xc3   :  { %v195_v49 = vadd.f32 %v194_v43, %v193_v41 }
  0xc5   :  { %v196_v55 = vrot.slane %v195_v49, 2 }
  0xc7   :  { %v197_v60 = vadd.f32 %v196_v55, %v195_v49 }
  0xc9   :  { %v198_v3 = vrot.slane %v197_v60, 1 }
  0xcb   :  { %v199_v12 = vadd.f32 %v198_v3, %v197_v60  ;;  %v61_v3 = vadd.s32 16, %v59_v54 }
  0xcd   :  { %v200_v16 = vmul.f32 0.001953125, %v199_v12  ;;  %v65_v7 = vand.u32 15, %v61_v3  ;;  %v1887_v12 = vld [vmem:[%s2673_s7 + $0x40] sm:$0xff] }
  0xcf   :  { %v202_v19 = vsub.f32 %v200_v16, %v201_v15  ;;  %vm1898_vm6 = vcmp.gt.s32.totalorder %v65_v7, 0  ;;  %v62_v16 = vadd.s32 24, %v59_v54  ;;  %v1418_v7 = vld [vmem:[%s2674_s3 + $0xf0] sm:$0xff] }
  0xd1   :  { %v204_v20 = vadd.f32 1e-05, %v202_v19 }
  0xd3   :  { %1537 = vrsqrt.f32 %v204_v20  ;;  %vm211_vm2 = vweird.f32 %v204_v20 }
  0xd9   :  { %v1538_v28 = vpop.eup %1537 }
  0xda   :  { %v206_v29 = vmul.f32 %v1538_v28, %v204_v20  ;;  %vm212_vm1 = vweird.f32 %v1538_v28  ;;  %v66_v20 = vand.u32 15, %v62_v16 }
  0xdb   :  { %vm213_vm3 = vmor %vm211_vm2, %vm212_vm1 }
  0xdc   :  { %v207_v30 = vmul.f32 %v1538_v28, %v206_v29  ;;  %vm1929_vm7 = vcmp.lt.s32.totalorder %v66_v20, 15  ;;  %v1956_v29 = vld [vmem:[%s2673_s7 + $0x8] sm:$0xff] }
  0xde   :  { %v208_v31 = vmul.f32 0.5, %v207_v30  ;;  %v1961_v30 = vld [vmem:[%s2673_s7] sm:$0xff] }
  0xe0   :  { %v209_v32 = vsub.f32 1.5, %v208_v31 }
  0xe2   :  { %v210_v33 = vmul.f32 %v1538_v28, %v209_v32 }
  0xe4   :  { %v214_v35 = vsel %vm213_vm3, %v1538_v28, %v210_v33  ;;  %v1949_v28 = vld [vmem:[%s2673_s7 + $0x10] sm:$0xff] }
  0xe5   :  { %v215_v36 = vmul.f32 %v214_v35, %v203_v34 }
  0xe7   :  { %v217_v38 = vmul.f32 %v215_v36, %v186_v2  ;;  %v220_v39 = vperm.slane %v215_v36, 0 }
  0xe9   :  { %v218_v40 = vsub.f32 %v216_v37, %v217_v38  ;;  %v222_v41 = vmul.f32 %v220_v39, %v1658_v8  ;;  %v223_v43 = vmul.f32 %v220_v39, %v1672_v10  ;;  %v224_v44 = vmul.f32 %v220_v39, %v1663_v9  ;;  %v1818_v9 = vld [vmem:[%s2673_s7 + $0x78] sm:$0xff]  ;;  %v1823_v10 = vld [vmem:[%s2673_s7 + $0x70] sm:$0xff] }
  0xea   :  { %v225_v45 = vmul.f32 %v220_v39, %v1677_v11  ;;  %v63_v8 = vand.u32 15, %v59_v54  ;;  %479 = vmatpush.msrb.mxu2 %v1818_v9  ;;  %512 = vmatpush.msrb.mxu3 %v1818_v9  ;;  %v1832_v11 = vld [vmem:[%s2673_s7 + $0x68] sm:$0xff] }
  0xeb   :  { %v227_v42 = vperm.slane %v218_v40, 0 }
  0xec   :  { %480 = vmatpush.msrb.mxu2 %v1823_v10  ;;  %513 = vmatpush.msrb.mxu3 %v1823_v10  ;;  %vm1836_vm4 = vcmp.gt.s32.totalorder %v63_v8, 0 }
  0xed   :  { %v229_v47 = vadd.f32 %v227_v42, %v222_v41  ;;  %v230_v48 = vadd.f32 %v227_v42, %v223_v43  ;;  %v231_v49 = vadd.f32 %v227_v42, %v224_v44  ;;  %v232_v50 = vadd.f32 %v227_v42, %v225_v45 }
  0xee   :  { %481 = vmatpush.msrb.mxu2 %v1832_v11  ;;  %514 = vmatpush.msrb.mxu3 %v1832_v11 }
  0xef   :  { %v233_v51 = vmax.f32 %v229_v47, 0.0  ;;  %v234_v52 = vmax.f32 %v230_v48, 0.0  ;;  %v235_v53 = vmax.f32 %v231_v49, 0.0  ;;  %v236_v55 = vmax.f32 %v232_v50, 0.0 }
  0xf0   :  { %482 = vmatpush.msrb.mxu2 %v1845_v59  ;;  %515 = vmatpush.msrb.mxu3 %v1845_v59 }
  0xf1   :  { %1372 = vmatmul.msk.f32.vlgmr.msra.gmra.mxu2 %vm53_vm0, %v233_v51  ;;  %286 = vst.msk [vmem:[#allocation2 + $0x8] sm:$0xff] %vm53_vm0, %v233_v51  ;;  %1384 = vmatmul.msk.f32.vlgmr.msra.gmra.mxu3 %vm53_vm0, %v233_v51 }
  0xf2   :  { %287 = vst.msk [vmem:[#allocation2 + $0x10] sm:$0xff] %vm53_vm0, %v234_v52  ;;  %483 = vmatpush.msrb.mxu2 %v1856_v63  ;;  %516 = vmatpush.msrb.mxu3 %v1856_v63 }
  0xf3   :  { %288 = vst.msk [vmem:[#allocation2 + $0x18] sm:$0xff] %vm53_vm0, %v235_v53 }
  0xf4   :  { %289 = vst.msk [vmem:[#allocation2 + $0x20] sm:$0xff] %vm53_vm0, %v236_v55  ;;  %484 = vmatpush.msrb.mxu2 %v1863_v0  ;;  %517 = vmatpush.msrb.mxu3 %v1863_v0 }
  0xf6   :  { %485 = vmatpush.msrb.mxu2 %v1876_v4  ;;  %518 = vmatpush.msrb.mxu3 %v1876_v4 }
  0xf8   :  { %v290_v58 = vld [vmem:[#allocation2 + $0x7] sm:$0xff]  ;;  %486 = vmatpush.msrb.mxu2 %v1887_v12  ;;  %519 = vmatpush.msrb.mxu3 %v1887_v12 }
  0xf9   :  { %1373 = vmatmul.msk.f32.gmra.mxu2 %vm53_vm0, %v234_v52  ;;  %1385 = vmatmul.msk.f32.gmra.mxu3 %vm53_vm0, %v234_v52  ;;  %v306_v60 = vld [vmem:[#allocation2 + $0x9] sm:$0xff]  ;;  %v302_v61 = vsel %vm1836_vm4, %v290_v58, 0.0 }
  0xfa   :  { %1400 = vmatmul.msk.f32.vlgmr.msra.gmra.mxu1 %vm53_vm0, %v306_v60  ;;  %1388 = vmatmul.msk.f32.vlgmr.msrb.gmra.mxu0 %vm53_vm0, %v302_v61  ;;  %v307_v2 = vld [vmem:[#allocation2 + $0x11] sm:$0xff] }
  0xfb   :  { %v319_v5 = vsel %vm1867_vm5, %v307_v2, 0.0  ;;  %v291_v6 = vld [vmem:[#allocation2 + $0xf] sm:$0xff]  ;;  %v292_v15 = vld [vmem:[#allocation2 + $0x17] sm:$0xff]  ;;  %487 = vmatpush.msrb.mxu2 %v1894_v13  ;;  %520 = vmatpush.msrb.mxu3 %v1894_v13  ;;  %v309_v24 = vld [vmem:[#allocation2 + $0x21] sm:$0xff] }
  0xfc   :  { %v308_v18 = vld [vmem:[#allocation2 + $0x19] sm:$0xff]  ;;  %v304_v19 = vsel %vm1898_vm6, %v292_v15, 0.0  ;;  %v321_v25 = vsel %vm1929_vm7, %v309_v24, 0.0  ;;  %v1417_v15 = vld [vmem:[%s2674_s3 + $0xe8] sm:$0xff] }
  0xfd   :  { %488 = vmatpush.msrb.mxu2 %v1907_v17  ;;  %521 = vmatpush.msrb.mxu3 %v1907_v17  ;;  %v293_v26 = vld [vmem:[#allocation2 + $0x1f] sm:$0xff] }
  0xff   :  { %489 = vmatpush.msrb.mxu2 %v1918_v21  ;;  %522 = vmatpush.msrb.mxu3 %v1918_v21 }
 0x101   :  { %1374 = vmatmul.msk.f32.gmra.mxu2 %vm53_vm0, %v235_v53  ;;  %1386 = vmatmul.msk.f32.gmra.mxu3 %vm53_vm0, %v235_v53 }
 0x102   :  { %1401 = vmatmul.msk.f32.gmra.mxu1 %vm53_vm0, %v319_v5  ;;  %1389 = vmatmul.msk.f32.gmra.mxu0 %vm53_vm0, %v291_v6  ;;  %v1419_v5 = vld [vmem:[%s2674_s3 + $0xf8] sm:$0xff] }
 0x103   :  { %490 = vmatpush.msrb.mxu2 %v1925_v22  ;;  %523 = vmatpush.msrb.mxu3 %v1925_v22 }
 0x104   :  { %650 = vmatpush.msra.mxu0 %v1419_v5  ;;  %v1410_v5 = vld [vmem:[%s2674_s3 + $0xb0] sm:$0xff] }
 0x105   :  { %491 = vmatpush.msrb.mxu2 %v1942_v27  ;;  %524 = vmatpush.msrb.mxu3 %v1942_v27 }
 0x106   :  { %651 = vmatpush.msra.mxu0 %v1418_v7  ;;  %v1431_v7 = vld [vmem:[%s2674_s3 + $0x148] sm:$0xff] }
 0x107   :  { %492 = vmatpush.msrb.mxu2 %v1949_v28  ;;  %525 = vmatpush.msrb.mxu3 %v1949_v28 }
 0x108   :  { %652 = vmatpush.msra.mxu0 %v1417_v15  ;;  %v1409_v15 = vld [vmem:[%s2674_s3 + $0xa8] sm:$0xff] }
 0x109   :  { %1375 = vmatmul.msk.f32.gmra.mxu2 %vm53_vm0, %v236_v55  ;;  %1387 = vmatmul.msk.f32.gmra.mxu3 %vm53_vm0, %v236_v55 }
 0x10a   :  { %1402 = vmatmul.msk.f32.gmra.mxu1 %vm53_vm0, %v308_v18  ;;  %1390 = vmatmul.msk.f32.gmra.mxu0 %vm53_vm0, %v304_v19  ;;  %v1416_v18 = vld [vmem:[%s2674_s3 + $0xe0] sm:$0xff] }
 0x10b   :  { %493 = vmatpush.msrb.mxu2 %v1956_v29  ;;  %526 = vmatpush.msrb.mxu3 %v1956_v29 }
 0x10c   :  { %653 = vmatpush.msra.mxu0 %v1416_v18 }
 0x10d   :  { %494 = vmatpush.msrb.mxu2 %v1961_v30  ;;  %527 = vmatpush.msrb.mxu3 %v1961_v30 }
 0x10f   :  { %778 = vmatpush.msra.mxu3 %v1818_v9 }
 0x111   :  { %779 = vmatpush.msra.mxu3 %v1823_v10 }
 0x112   :  { %1403 = vmatmul.msk.f32.gmra.mxu1 %vm53_vm0, %v321_v25  ;;  %1391 = vmatmul.msk.f32.gmra.mxu0 %vm53_vm0, %v293_v26  ;;  %v1437_v25 = vld [vmem:[%s2674_s3 + $0x178] sm:$0xff] }
 0x113   :  { %780 = vmatpush.msra.mxu3 %v1832_v11  ;;  %v1415_v26 = vld [vmem:[%s2674_s3 + $0xd8] sm:$0xff]  ;;  %725 = vmatpush.msra.mxu2 %v1437_v25 }
 0x114   :  { %654 = vmatpush.msra.mxu0 %v1415_v26 }
 0x115   :  { %781 = vmatpush.msra.mxu3 %v1845_v59 }
 0x117   :  { %782 = vmatpush.msra.mxu3 %v1856_v63 }
 0x119   :  { %783 = vmatpush.msra.mxu3 %v1863_v0 }
 0x11b   :  { %784 = vmatpush.msra.mxu3 %v1876_v4 }
 0x11d   :  { %785 = vmatpush.msra.mxu3 %v1887_v12 }
 0x11f   :  { %786 = vmatpush.msra.mxu3 %v1894_v13 }
 0x121   :  { %787 = vmatpush.msra.mxu3 %v1907_v17 }
 0x123   :  { %788 = vmatpush.msra.mxu3 %v1918_v21 }
 0x125   :  { %789 = vmatpush.msra.mxu3 %v1925_v22 }
 0x127   :  { %790 = vmatpush.msra.mxu3 %v1942_v27 }
 0x129   :  { %791 = vmatpush.msra.mxu3 %v1949_v28 }
 0x12b   :  { %792 = vmatpush.msra.mxu3 %v1956_v29 }
 0x12d   :  { %793 = vmatpush.msra.mxu3 %v1961_v30 }
 0x174   :  { %v356_v31 = vpop.f32.mrf.mxu3  ;;  %v2003_v55 = vpop.f32.mrf.mxu2 }
 0x177   :  { %v447_v32 = vpop.f32.mrf.mxu1  ;;  %v397_v33 = vpop.f32.mrf.mxu0 }
 0x178   :  { %v398_v34 = vadd.f32 %v397_v33, %v356_v31  ;;  %v632_v31 = vld [vmem:[%s2674_s3 + $0x78] sm:$0xff] }
 0x179   :  { %679 = vmatpush.msrb.mxu1 %v632_v31  ;;  %v625_v31 = vld [vmem:[%s2674_s3 + $0x40] sm:$0xff] }
 0x17a   :  { %v1981_v35 = vadd.f32 %v447_v32, %v398_v34 }
 0x17c   :  { %v359_v36 = vpop.f32.mrf.mxu3  ;;  %495 = vmatmul.f32.vlgmr.msrb.gmra.mxu2 %v1981_v35  ;;  %v508_v37 = vmul.f32 %v1981_v35, %v1981_v35  ;;  %v2005_v8 = vpop.f32.mrf.mxu2 }
 0x17e   :  { %528 = vmatmul.f32.vlgmr.msrb.gmra.mxu3 %v508_v37  ;;  %v1414_v37 = vld [vmem:[%s2674_s3 + $0xd0] sm:$0xff] }
 0x17f   :  { %v450_v38 = vpop.f32.mrf.mxu1  ;;  %v400_v39 = vpop.f32.mrf.mxu0  ;;  %655 = vmatpush.msra.mxu0 %v1414_v37  ;;  %v624_v37 = vld [vmem:[%s2674_s3 + $0x38] sm:$0xff] }
 0x180   :  { %v401_v40 = vadd.f32 %v400_v39, %v359_v36  ;;  %v1436_v36 = vld [vmem:[%s2674_s3 + $0x170] sm:$0xff] }
 0x181   :  { %726 = vmatpush.msra.mxu2 %v1436_v36 }
 0x182   :  { %v1988_v41 = vadd.f32 %v450_v38, %v401_v40  ;;  %v631_v38 = vld [vmem:[%s2674_s3 + $0x70] sm:$0xff] }
 0x183   :  { %680 = vmatpush.msrb.mxu1 %v631_v38  ;;  %v1428_v38 = vld [vmem:[%s2674_s3 + $0x130] sm:$0xff] }
 0x184   :  { %498 = vmatmul.f32.gmra.mxu2 %v1988_v41  ;;  %v509_v42 = vmul.f32 %v1988_v41, %v1988_v41  ;;  %v362_v43 = vpop.f32.mrf.mxu3  ;;  %v2007_v57 = vpop.f32.mrf.mxu2 }
 0x186   :  { %531 = vmatmul.f32.gmra.mxu3 %v509_v42  ;;  %v1435_v42 = vld [vmem:[%s2674_s3 + $0x168] sm:$0xff] }
 0x187   :  { %v453_v44 = vpop.f32.mrf.mxu1  ;;  %v403_v45 = vpop.f32.mrf.mxu0  ;;  %727 = vmatpush.msra.mxu2 %v1435_v42 }
 0x188   :  { %v404_v46 = vadd.f32 %v403_v45, %v362_v43  ;;  %v1413_v43 = vld [vmem:[%s2674_s3 + $0xc8] sm:$0xff] }
 0x189   :  { %656 = vmatpush.msra.mxu0 %v1413_v43  ;;  %v623_v43 = vld [vmem:[%s2674_s3 + $0x30] sm:$0xff] }
 0x18a   :  { %v1993_v47 = vadd.f32 %v453_v44, %v404_v46  ;;  %v630_v44 = vld [vmem:[%s2674_s3 + $0x68] sm:$0xff] }
 0x18b   :  { %681 = vmatpush.msrb.mxu1 %v630_v44  ;;  %v1427_v44 = vld [vmem:[%s2674_s3 + $0x128] sm:$0xff] }
 0x18c   :  { %501 = vmatmul.f32.gmra.mxu2 %v1993_v47  ;;  %v510_v48 = vmul.f32 %v1993_v47, %v1993_v47  ;;  %v365_v49 = vpop.f32.mrf.mxu3  ;;  %v2009_v58 = vpop.f32.mrf.mxu2 }
 0x18e   :  { %534 = vmatmul.f32.gmra.mxu3 %v510_v48  ;;  %v1434_v48 = vld [vmem:[%s2674_s3 + $0x160] sm:$0xff] }
 0x18f   :  { %v406_v50 = vpop.f32.mrf.mxu0  ;;  %v456_v52 = vpop.f32.mrf.mxu1  ;;  %728 = vmatpush.msra.mxu2 %v1434_v48  ;;  %v622_v48 = vld [vmem:[%s2674_s3 + $0x28] sm:$0xff] }
 0x190   :  { %v407_v51 = vadd.f32 %v406_v50, %v365_v49  ;;  %v1412_v49 = vld [vmem:[%s2674_s3 + $0xc0] sm:$0xff] }
 0x191   :  { %v629_v50 = vld [vmem:[%s2674_s3 + $0x60] sm:$0xff]  ;;  %657 = vmatpush.msra.mxu0 %v1412_v49 }
 0x192   :  { %v1998_v53 = vadd.f32 %v456_v52, %v407_v51  ;;  %682 = vmatpush.msrb.mxu1 %v629_v50  ;;  %v1426_v49 = vld [vmem:[%s2674_s3 + $0x120] sm:$0xff] }
 0x193   :  { %v1404_v50 = vld [vmem:[%s2674_s3 + $0x80] sm:$0xff] }
 0x194   :  { %504 = vmatmul.f32.gmra.mxu2 %v1998_v53  ;;  %v511_v54 = vmul.f32 %v1998_v53, %v1998_v53 }
 0x196   :  { %537 = vmatmul.f32.gmra.mxu3 %v511_v54  ;;  %v1433_v54 = vld [vmem:[%s2674_s3 + $0x158] sm:$0xff] }
 0x197   :  { %729 = vmatpush.msra.mxu2 %v1433_v54  ;;  %v1425_v54 = vld [vmem:[%s2674_s3 + $0x118] sm:$0xff] }
 0x1ff   :  { %v496_v60 = vpop.f32.mrf.mxu2 }
 0x201   :  { %v529_v61 = vpop.f32.mrf.mxu3 }
 0x207   :  { %v499_v62 = vpop.f32.mrf.mxu2 }
 0x208   :  { %v541_v16 = vadd.f32 %v499_v62, %v496_v60  ;;  %v1411_v60 = vld [vmem:[%s2674_s3 + $0xb8] sm:$0xff] }
 0x209   :  { %v532_v2 = vpop.f32.mrf.mxu3  ;;  %658 = vmatpush.msra.mxu0 %v1411_v60  ;;  %v620_v60 = vld [vmem:[%s2674_s3 + $0x18] sm:$0xff] }
 0x20a   :  { %v551_v19 = vadd.f32 %v532_v2, %v529_v61  ;;  %v628_v61 = vld [vmem:[%s2674_s3 + $0x58] sm:$0xff] }
 0x20b   :  { %683 = vmatpush.msrb.mxu1 %v628_v61  ;;  %659 = vmatpush.msra.mxu0 %v1410_v5  ;;  %v1424_v61 = vld [vmem:[%s2674_s3 + $0x110] sm:$0xff] }
 0x20d   :  { %660 = vmatpush.msra.mxu0 %v1409_v15 }
 0x20f   :  { %v502_v3 = vpop.f32.mrf.mxu2 }
 0x210   :  { %v542_v20 = vadd.f32 %v541_v16, %v502_v3  ;;  %v1432_v3 = vld [vmem:[%s2674_s3 + $0x150] sm:$0xff] }
 0x211   :  { %v535_v6 = vpop.f32.mrf.mxu3  ;;  %730 = vmatpush.msra.mxu2 %v1432_v3  ;;  %v618_v3 = vld [vmem:[%s2674_s3 + $0x8] sm:$0xff] }
 0x212   :  { %v552_v32 = vadd.f32 %v551_v19, %v535_v6  ;;  %v627_v6 = vld [vmem:[%s2674_s3 + $0x50] sm:$0xff]  ;;  %v626_v19 = vld [vmem:[%s2674_s3 + $0x48] sm:$0xff] }
 0x213   :  { %684 = vmatpush.msrb.mxu1 %v627_v6  ;;  %731 = vmatpush.msra.mxu2 %v1431_v7  ;;  %v617_v6 = vld [vmem:[%s2674_s3] sm:$0xff] }
 0x215   :  { %685 = vmatpush.msrb.mxu1 %v626_v19 }
 0x217   :  { %v505_v24 = vpop.f32.mrf.mxu2  ;;  %686 = vmatpush.msrb.mxu1 %v625_v31 }
 0x218   :  { %v543_v33 = vadd.f32 %v542_v20, %v505_v24  ;;  %v1430_v20 = vld [vmem:[%s2674_s3 + $0x140] sm:$0xff] }
 0x219   :  { %v538_v34 = vpop.f32.mrf.mxu3  ;;  %v1408_v24 = vld [vmem:[%s2674_s3 + $0xa0] sm:$0xff]  ;;  %732 = vmatpush.msra.mxu2 %v1430_v20  ;;  %687 = vmatpush.msrb.mxu1 %v624_v37 }
 0x21a   :  { %v544_v39 = vrot.slane %v543_v33, 4  ;;  %v553_v40 = vadd.f32 %v552_v32, %v538_v34  ;;  %v1429_v32 = vld [vmem:[%s2674_s3 + $0x138] sm:$0xff]  ;;  %661 = vmatpush.msra.mxu0 %v1408_v24 }
 0x21b   :  { %733 = vmatpush.msra.mxu2 %v1429_v32  ;;  %688 = vmatpush.msrb.mxu1 %v623_v43 }
 0x21c   :  { %v545_v45 = vadd.f32 %v544_v39, %v543_v33  ;;  %v554_v46 = vrot.slane %v553_v40, 4  ;;  %v1407_v33 = vld [vmem:[%s2674_s3 + $0x98] sm:$0xff]  ;;  %v1406_v39 = vld [vmem:[%s2674_s3 + $0x90] sm:$0xff] }
 0x21d   :  { %662 = vmatpush.msra.mxu0 %v1407_v33  ;;  %734 = vmatpush.msra.mxu2 %v1428_v38 }
 0x21e   :  { %v546_v51 = vrot.slane %v545_v45, 2  ;;  %v555_v52 = vadd.f32 %v554_v46, %v553_v40  ;;  %689 = vmatpush.msrb.mxu1 %v622_v48 }
 0x21f   :  { %663 = vmatpush.msra.mxu0 %v1406_v39  ;;  %735 = vmatpush.msra.mxu2 %v1427_v44 }
 0x220   :  { %v547_v62 = vadd.f32 %v546_v51, %v545_v45  ;;  %v556_v2 = vrot.slane %v555_v52, 2  ;;  %v1405_v45 = vld [vmem:[%s2674_s3 + $0x88] sm:$0xff] }
 0x221   :  { %664 = vmatpush.msra.mxu0 %v1405_v45  ;;  %736 = vmatpush.msra.mxu2 %v1426_v49 }
 0x222   :  { %v548_v16 = vrot.slane %v547_v62, 1  ;;  %v557_v18 = vadd.f32 %v556_v2, %v555_v52  ;;  %v621_v52 = vld [vmem:[%s2674_s3 + $0x20] sm:$0xff]  ;;  %v1423_v2 = vld [vmem:[%s2674_s3 + $0x108] sm:$0xff] }
 0x223   :  { %665 = vmatpush.msra.mxu0 %v1404_v50  ;;  %690 = vmatpush.msrb.mxu1 %v621_v52 }
 0x224   :  { %v549_v25 = vadd.f32 %v548_v16, %v547_v62  ;;  %v558_v26 = vrot.slane %v557_v18, 1  ;;  %737 = vmatpush.msra.mxu2 %v1425_v54  ;;  %v619_v62 = vld [vmem:[%s2674_s3 + $0x10] sm:$0xff] }
 0x225   :  { %811 = vmatpush.msrb.mxu0 %v1818_v9  ;;  %691 = vmatpush.msrb.mxu1 %v620_v60  ;;  %v1422_v9 = vld [vmem:[%s2674_s3 + $0x100] sm:$0xff] }
 0x226   :  { %v2101_v34 = vmul.f32 0.001953125, %v549_v25  ;;  %v559_v36 = vadd.f32 %v558_v26, %v557_v18  ;;  %738 = vmatpush.msra.mxu2 %v1424_v61 }
 0x227   :  { %812 = vmatpush.msrb.mxu0 %v1823_v10  ;;  %692 = vmatpush.msrb.mxu1 %v619_v62 }
 0x228   :  { %v561_v40 = vmul.f32 %v2101_v34, %v2101_v34  ;;  %v560_v42 = vmul.f32 0.001953125, %v559_v36  ;;  %739 = vmatpush.msra.mxu2 %v1423_v2 }
 0x229   :  { %813 = vmatpush.msrb.mxu0 %v1832_v11  ;;  %693 = vmatpush.msrb.mxu1 %v618_v3  ;;  %v563_v11 = vld [vmem:[%s2675_s10] sm:$0x1] }
 0x22a   :  { %v562_v46 = vsub.f32 %v560_v42, %v561_v40  ;;  %740 = vmatpush.msra.mxu2 %v1422_v9 }
 0x22b   :  { %814 = vmatpush.msrb.mxu0 %v1845_v59  ;;  %694 = vmatpush.msrb.mxu1 %v617_v6 }
 0x22c   :  { %v564_v51 = vadd.f32 1e-05, %v562_v46 }
 0x22d   :  { %815 = vmatpush.msrb.mxu0 %v1856_v63 }
 0x22e   :  { %1539 = vrsqrt.f32 %v564_v51  ;;  %vm571_vm9 = vweird.f32 %v564_v51 }
 0x22f   :  { %816 = vmatpush.msrb.mxu0 %v1863_v0  ;;  %v576_v0 = vld [vmem:[%s2676_s11] sm:$0x1] }
 0x231   :  { %817 = vmatpush.msrb.mxu0 %v1876_v4 }
 0x233   :  { %818 = vmatpush.msrb.mxu0 %v1887_v12 }
 0x234   :  { %v1540_v5 = vpop.eup %1539 }
 0x235   :  { %v566_v7 = vmul.f32 %v1540_v5, %v564_v51  ;;  %vm572_vm8 = vweird.f32 %v1540_v5  ;;  %819 = vmatpush.msrb.mxu0 %v1894_v13 }
 0x236   :  { %vm573_vm10 = vmor %vm571_vm9, %vm572_vm8 }
 0x237   :  { %v567_v10 = vmul.f32 %v1540_v5, %v566_v7  ;;  %820 = vmatpush.msrb.mxu0 %v1907_v17 }
 0x239   :  { %v568_v15 = vmul.f32 0.5, %v567_v10  ;;  %821 = vmatpush.msrb.mxu0 %v1918_v21 }
 0x23b   :  { %v569_v16 = vsub.f32 1.5, %v568_v15  ;;  %822 = vmatpush.msrb.mxu0 %v1925_v22 }
 0x23d   :  { %v570_v18 = vmul.f32 %v1540_v5, %v569_v16  ;;  %823 = vmatpush.msrb.mxu0 %v1942_v27 }
 0x23f   :  { %v574_v59 = vsel %vm573_vm10, %v1540_v5, %v570_v18  ;;  %824 = vmatpush.msrb.mxu0 %v1949_v28 }
 0x240   :  { %v575_v63 = vmul.f32 %v574_v59, %v563_v11 }
 0x241   :  { %825 = vmatpush.msrb.mxu0 %v1956_v29 }
 0x242   :  { %v577_v4 = vmul.f32 %v575_v63, %v2101_v34  ;;  %v580_v19 = vperm.slane %v575_v63, 0  ;;  %v1455_v63 = vld [vmem:[%s2677_s4 + $0xf8] sm:$0xff] }
 0x243   :  { %826 = vmatpush.msrb.mxu0 %v1961_v30  ;;  %949 = vmatpush.msra.mxu1 %v1455_v63 }
 0x244   :  { %v578_v20 = vsub.f32 %v576_v0, %v577_v4  ;;  %v582_v24 = vmul.f32 %v580_v19, %v1981_v35  ;;  %v583_v13 = vmul.f32 %v580_v19, %v1988_v41  ;;  %v584_v25 = vmul.f32 %v580_v19, %v1993_v47 }
 0x245   :  { %v585_v26 = vmul.f32 %v580_v19, %v1998_v53 }
 0x246   :  { %v587_v12 = vperm.slane %v578_v20, 0  ;;  %v1453_v20 = vld [vmem:[%s2677_s4 + $0xe8] sm:$0xff] }
 0x248   :  { %v589_v17 = vadd.f32 %v587_v12, %v582_v24  ;;  %v590_v31 = vadd.f32 %v587_v12, %v583_v13  ;;  %v591_v32 = vadd.f32 %v587_v12, %v584_v25  ;;  %v592_v33 = vadd.f32 %v587_v12, %v585_v26  ;;  %v1452_v25 = vld [vmem:[%s2677_s4 + $0xe0] sm:$0xff] }
 0x24a   :  { %v593_v21 = vmax.f32 %v589_v17, 0.0  ;;  %v594_v34 = vmax.f32 %v590_v31, 0.0  ;;  %v595_v35 = vmax.f32 %v591_v32, 0.0  ;;  %v596_v36 = vmax.f32 %v592_v33, 0.0  ;;  %v931_v31 = vld [vmem:[%s2677_s4 + $0x78] sm:$0xff] }
 0x24b   :  { %v1451_v32 = vld [vmem:[%s2677_s4 + $0xd8] sm:$0xff]  ;;  %978 = vmatpush.msrb.mxu2 %v931_v31  ;;  %v918_v31 = vld [vmem:[%s2677_s4 + $0x10] sm:$0xff] }
 0x24c   :  { %597 = vst [vmem:[#allocation3 + $0x8] sm:$0xff] %v593_v21  ;;  %666 = vmatmul.f32.vlgmr.msra.gmra.mxu0 %v593_v21  ;;  %v1473_v33 = vld [vmem:[%s2677_s4 + $0x178] sm:$0xff] }
 0x24d   :  { %598 = vst [vmem:[#allocation3 + $0x10] sm:$0xff] %v594_v34  ;;  %1024 = vmatpush.msrb.mxu3 %v1473_v33  ;;  %v917_v33 = vld [vmem:[%s2677_s4 + $0x8] sm:$0xff] }
 0x24e   :  { %599 = vst [vmem:[#allocation3 + $0x18] sm:$0xff] %v595_v35 }
 0x24f   :  { %600 = vst [vmem:[#allocation3 + $0x20] sm:$0xff] %v596_v36 }
 0x253   :  { %v601_v22 = vld [vmem:[#allocation3 + $0x7] sm:$0xff] }
 0x254   :  { %669 = vmatmul.f32.gmra.mxu0 %v594_v34  ;;  %1420 = vmatmul.msk.f32.vlgmr.msrb.gmra.mxu1 %vm1836_vm4, %v601_v22  ;;  %v609_v27 = vld [vmem:[#allocation3 + $0x9] sm:$0xff]  ;;  %v1450_v22 = vld [vmem:[%s2677_s4 + $0xd0] sm:$0xff] }
 0x255   :  { %741 = vmatmul.f32.vlgmr.msra.gmra.mxu2 %v609_v27  ;;  %v602_v28 = vld [vmem:[#allocation3 + $0xf] sm:$0xff]  ;;  %v603_v29 = vld [vmem:[#allocation3 + $0x17] sm:$0xff]  ;;  %v1472_v27 = vld [vmem:[%s2677_s4 + $0x170] sm:$0xff] }
 0x256   :  { %v610_v41 = vld [vmem:[#allocation3 + $0x11] sm:$0xff]  ;;  %v611_v30 = vld [vmem:[#allocation3 + $0x19] sm:$0xff]  ;;  %v612_v53 = vld [vmem:[#allocation3 + $0x21] sm:$0xff]  ;;  %1025 = vmatpush.msrb.mxu3 %v1472_v27 }
 0x257   :  { %v604_v47 = vld [vmem:[#allocation3 + $0x1f] sm:$0xff] }
 0x25c   :  { %672 = vmatmul.f32.gmra.mxu0 %v595_v35  ;;  %698 = vmatmul.f32.gmra.mxu1 %v602_v28 }
 0x25d   :  { %1438 = vmatmul.msk.f32.gmra.mxu2 %vm1867_vm5, %v610_v41 }
 0x264   :  { %675 = vmatmul.f32.gmra.mxu0 %v596_v36  ;;  %1421 = vmatmul.msk.f32.gmra.mxu1 %vm1898_vm6, %v603_v29  ;;  %v930_v36 = vld [vmem:[%s2677_s4 + $0x70] sm:$0xff]  ;;  %v929_v29 = vld [vmem:[%s2677_s4 + $0x68] sm:$0xff] }
 0x265   :  { %747 = vmatmul.f32.gmra.mxu2 %v611_v30  ;;  %v1449_v30 = vld [vmem:[%s2677_s4 + $0xc8] sm:$0xff] }
 0x266   :  { %979 = vmatpush.msrb.mxu2 %v930_v36 }
 0x268   :  { %980 = vmatpush.msrb.mxu2 %v929_v29  ;;  %v862_v29 = vld [vmem:[%s2678_s12] sm:$0x1] }
 0x26c   :  { %704 = vmatmul.f32.gmra.mxu1 %v604_v47  ;;  %v1471_v47 = vld [vmem:[%s2677_s4 + $0x168] sm:$0xff] }
 0x26d   :  { %1439 = vmatmul.msk.f32.gmra.mxu2 %vm1929_vm7, %v612_v53  ;;  %1026 = vmatpush.msrb.mxu3 %v1471_v47 }
 0x2c9   :  { %v667_v37 = vpop.f32.mrf.mxu0 }
 0x2d1   :  { %v696_v38 = vpop.f32.mrf.mxu1  ;;  %v670_v44 = vpop.f32.mrf.mxu0 }
 0x2d2   :  { %v697_v39 = vadd.f32 %v696_v38, %v667_v37  ;;  %v928_v38 = vld [vmem:[%s2677_s4 + $0x60] sm:$0xff] }
 0x2d3   :  { %981 = vmatpush.msrb.mxu2 %v928_v38 }
 0x2d8   :  { %v742_v40 = vpop.f32.mrf.mxu2 }
 0x2d9   :  { %v754_v42 = vadd.f32 %v742_v40, %v697_v39  ;;  %v699_v43 = vpop.f32.mrf.mxu1  ;;  %v673_v54 = vpop.f32.mrf.mxu0  ;;  %v1448_v39 = vld [vmem:[%s2677_s4 + $0xc0] sm:$0xff] }
 0x2da   :  { %v700_v48 = vadd.f32 %v699_v43, %v670_v44  ;;  %v1470_v40 = vld [vmem:[%s2677_s4 + $0x160] sm:$0xff]  ;;  %v927_v43 = vld [vmem:[%s2677_s4 + $0x58] sm:$0xff] }
 0x2db   :  { %v2195_v45 = vadd.f32 %v754_v42, %v2003_v55  ;;  %1027 = vmatpush.msrb.mxu3 %v1470_v40  ;;  %v1447_v44 = vld [vmem:[%s2677_s4 + $0xb8] sm:$0xff]  ;;  %982 = vmatpush.msrb.mxu2 %v927_v43 }
 0x2dd   :  { %794 = vmatmul.f32.vlgmr.msra.gmra.mxu3 %v2195_v45  ;;  %v807_v46 = vmul.f32 %v2195_v45, %v2195_v45 }
 0x2df   :  { %827 = vmatmul.f32.vlgmr.msrb.gmra.mxu0 %v807_v46  ;;  %v1469_v46 = vld [vmem:[%s2677_s4 + $0x158] sm:$0xff] }
 0x2e0   :  { %v745_v49 = vpop.f32.mrf.mxu2  ;;  %1028 = vmatpush.msrb.mxu3 %v1469_v46 }
 0x2e1   :  { %v755_v50 = vadd.f32 %v745_v49, %v700_v48  ;;  %v702_v51 = vpop.f32.mrf.mxu1  ;;  %v676_v9 = vpop.f32.mrf.mxu0 }
 0x2e2   :  { %v703_v60 = vadd.f32 %v702_v51, %v673_v54  ;;  %v1446_v51 = vld [vmem:[%s2677_s4 + $0xb0] sm:$0xff] }
 0x2e3   :  { %v2201_v52 = vadd.f32 %v755_v50, %v2005_v8  ;;  %v926_v50 = vld [vmem:[%s2677_s4 + $0x50] sm:$0xff] }
 0x2e4   :  { %983 = vmatpush.msrb.mxu2 %v926_v50  ;;  %v1468_v54 = vld [vmem:[%s2677_s4 + $0x150] sm:$0xff] }
 0x2e5   :  { %797 = vmatmul.f32.gmra.mxu3 %v2201_v52  ;;  %v808_v55 = vmul.f32 %v2201_v52, %v2201_v52 }
 0x2e6   :  { %1029 = vmatpush.msrb.mxu3 %v1468_v54 }
 0x2e7   :  { %830 = vmatmul.f32.gmra.mxu0 %v808_v55 }
 0x2e8   :  { %v748_v61 = vpop.f32.mrf.mxu2 }
 0x2e9   :  { %v756_v62 = vadd.f32 %v748_v61, %v703_v60  ;;  %v705_v3 = vpop.f32.mrf.mxu1  ;;  %v925_v60 = vld [vmem:[%s2677_s4 + $0x48] sm:$0xff] }
 0x2ea   :  { %v706_v5 = vadd.f32 %v705_v3, %v676_v9  ;;  %v1445_v61 = vld [vmem:[%s2677_s4 + $0xa8] sm:$0xff]  ;;  %984 = vmatpush.msrb.mxu2 %v925_v60  ;;  %v924_v9 = vld [vmem:[%s2677_s4 + $0x40] sm:$0xff] }
 0x2eb   :  { %v2207_v2 = vadd.f32 %v756_v62, %v2007_v57  ;;  %v1467_v62 = vld [vmem:[%s2677_s4 + $0x148] sm:$0xff] }
 0x2ec   :  { %1030 = vmatpush.msrb.mxu3 %v1467_v62  ;;  %985 = vmatpush.msrb.mxu2 %v924_v9  ;;  %v1070_v9 = vld [vmem:[%s2673_s7 + $0x68] sm:$0xff] }
 0x2ed   :  { %800 = vmatmul.f32.gmra.mxu3 %v2207_v2  ;;  %v809_v8 = vmul.f32 %v2207_v2, %v2207_v2 }
 0x2ef   :  { %833 = vmatmul.f32.gmra.mxu0 %v809_v8 }
 0x2f0   :  { %v751_v6 = vpop.f32.mrf.mxu2 }
 0x2f1   :  { %v757_v7 = vadd.f32 %v751_v6, %v706_v5  ;;  %v1444_v5 = vld [vmem:[%s2677_s4 + $0xa0] sm:$0xff] }
 0x2f2   :  { %v1466_v6 = vld [vmem:[%s2677_s4 + $0x140] sm:$0xff] }
 0x2f3   :  { %v2213_v10 = vadd.f32 %v757_v7, %v2009_v58  ;;  %v1454_v58 = vld [vmem:[%s2677_s4 + $0xf0] sm:$0xff]  ;;  %1031 = vmatpush.msrb.mxu3 %v1466_v6 }
 0x2f4   :  { %950 = vmatpush.msra.mxu1 %v1454_v58  ;;  %v1441_v58 = vld [vmem:[%s2677_s4 + $0x88] sm:$0xff] }
 0x2f5   :  { %803 = vmatmul.f32.gmra.mxu3 %v2213_v10  ;;  %v810_v57 = vmul.f32 %v2213_v10, %v2213_v10 }
 0x2f6   :  { %951 = vmatpush.msra.mxu1 %v1453_v20 }
 0x2f7   :  { %836 = vmatmul.f32.gmra.mxu0 %v810_v57  ;;  %v923_v57 = vld [vmem:[%s2677_s4 + $0x38] sm:$0xff] }
 0x2f8   :  { %952 = vmatpush.msra.mxu1 %v1452_v25  ;;  %986 = vmatpush.msrb.mxu2 %v923_v57  ;;  %v1068_v57 = vld [vmem:[%s2673_s7 + $0x58] sm:$0xff] }
 0x2fa   :  { %953 = vmatpush.msra.mxu1 %v1451_v32  ;;  %v1460_v32 = vld [vmem:[%s2677_s4 + $0x110] sm:$0xff] }
 0x2fc   :  { %954 = vmatpush.msra.mxu1 %v1450_v22 }
 0x2fe   :  { %955 = vmatpush.msra.mxu1 %v1449_v30 }
 0x300   :  { %956 = vmatpush.msra.mxu1 %v1448_v39 }
 0x302   :  { %957 = vmatpush.msra.mxu1 %v1447_v44 }
 0x304   :  { %958 = vmatpush.msra.mxu1 %v1446_v51 }
 0x306   :  { %959 = vmatpush.msra.mxu1 %v1445_v61 }
 0x308   :  { %960 = vmatpush.msra.mxu1 %v1444_v5  ;;  %v1069_v5 = vld [vmem:[%s2673_s7 + $0x60] sm:$0xff] }
 0x35c   :  { %v828_v15 = vpop.f32.mrf.mxu0 }
 0x360   :  { %v795_v16 = vpop.f32.mrf.mxu3 }
 0x364   :  { %v831_v11 = vpop.f32.mrf.mxu0 }
 0x365   :  { %v850_v4 = vadd.f32 %v831_v11, %v828_v15  ;;  %v1443_v15 = vld [vmem:[%s2677_s4 + $0x98] sm:$0xff]  ;;  %v922_v11 = vld [vmem:[%s2677_s4 + $0x30] sm:$0xff] }
 0x366   :  { %961 = vmatpush.msra.mxu1 %v1443_v15  ;;  %987 = vmatpush.msrb.mxu2 %v922_v11  ;;  %v1067_v15 = vld [vmem:[%s2673_s7 + $0x50] sm:$0xff] }
 0x368   :  { %v798_v18 = vpop.f32.mrf.mxu3 }
 0x369   :  { %v840_v12 = vadd.f32 %v798_v18, %v795_v16  ;;  %v1465_v16 = vld [vmem:[%s2677_s4 + $0x138] sm:$0xff]  ;;  %v1442_v18 = vld [vmem:[%s2677_s4 + $0x90] sm:$0xff] }
 0x36a   :  { %1032 = vmatpush.msrb.mxu3 %v1465_v16  ;;  %962 = vmatpush.msra.mxu1 %v1442_v18  ;;  %v1066_v16 = vld [vmem:[%s2673_s7 + $0x48] sm:$0xff] }
 0x36c   :  { %v834_v59 = vpop.f32.mrf.mxu0  ;;  %963 = vmatpush.msra.mxu1 %v1441_v58  ;;  %v1065_v58 = vld [vmem:[%s2673_s7 + $0x40] sm:$0xff] }
 0x36d   :  { %v851_v19 = vadd.f32 %v850_v4, %v834_v59  ;;  %v1464_v59 = vld [vmem:[%s2677_s4 + $0x130] sm:$0xff]  ;;  %v921_v4 = vld [vmem:[%s2677_s4 + $0x28] sm:$0xff] }
 0x36e   :  { %1033 = vmatpush.msrb.mxu3 %v1464_v59  ;;  %988 = vmatpush.msrb.mxu2 %v921_v4 }
 0x370   :  { %v801_v0 = vpop.f32.mrf.mxu3 }
 0x371   :  { %v841_v26 = vadd.f32 %v840_v12, %v801_v0  ;;  %v1440_v12 = vld [vmem:[%s2677_s4 + $0x80] sm:$0xff] }
 0x372   :  { %964 = vmatpush.msra.mxu1 %v1440_v12  ;;  %v1061_v12 = vld [vmem:[%s2673_s7 + $0x20] sm:$0xff] }
 0x374   :  { %v837_v24 = vpop.f32.mrf.mxu0 }
 0x375   :  { %v852_v13 = vadd.f32 %v851_v19, %v837_v24  ;;  %v1463_v19 = vld [vmem:[%s2677_s4 + $0x128] sm:$0xff]  ;;  %v920_v24 = vld [vmem:[%s2677_s4 + $0x20] sm:$0xff] }
 0x376   :  { %1034 = vmatpush.msrb.mxu3 %v1463_v19  ;;  %989 = vmatpush.msrb.mxu2 %v920_v24  ;;  %v1064_v19 = vld [vmem:[%s2673_s7 + $0x38] sm:$0xff]  ;;  %v1062_v24 = vld [vmem:[%s2673_s7 + $0x28] sm:$0xff] }
 0x377   :  { %v853_v17 = vrot.slane %v852_v13, 4 }
 0x378   :  { %v804_v21 = vpop.f32.mrf.mxu3 }
 0x379   :  { %v854_v34 = vadd.f32 %v853_v17, %v852_v13  ;;  %v842_v35 = vadd.f32 %v841_v26, %v804_v21  ;;  %v1462_v13 = vld [vmem:[%s2677_s4 + $0x120] sm:$0xff]  ;;  %v919_v26 = vld [vmem:[%s2677_s4 + $0x18] sm:$0xff]  ;;  %v1459_v21 = vld [vmem:[%s2677_s4 + $0x108] sm:$0xff] }
 0x37a   :  { %v1461_v17 = vld [vmem:[%s2677_s4 + $0x118] sm:$0xff]  ;;  %1035 = vmatpush.msrb.mxu3 %v1462_v13  ;;  %990 = vmatpush.msrb.mxu2 %v919_v26  ;;  %v1058_v26 = vld [vmem:[%s2673_s7 + $0x8] sm:$0xff] }
 0x37b   :  { %v855_v28 = vrot.slane %v854_v34, 2  ;;  %v843_v41 = vrot.slane %v842_v35, 4  ;;  %v1060_v13 = vld [vmem:[%s2673_s7 + $0x18] sm:$0xff] }
 0x37c   :  { %1036 = vmatpush.msrb.mxu3 %v1461_v17  ;;  %991 = vmatpush.msrb.mxu2 %v918_v31  ;;  %v1057_v17 = vld [vmem:[%s2673_s7] sm:$0xff] }
 0x37d   :  { %v856_v53 = vadd.f32 %v855_v28, %v854_v34  ;;  %v844_v37 = vadd.f32 %v843_v41, %v842_v35  ;;  %v916_v34 = vld [vmem:[%s2677_s4] sm:$0xff] }
 0x37e   :  { %1037 = vmatpush.msrb.mxu3 %v1460_v32  ;;  %992 = vmatpush.msrb.mxu2 %v917_v33  ;;  %v1458_v35 = vld [vmem:[%s2677_s4 + $0x100] sm:$0xff] }
 0x37f   :  { %v845_v42 = vrot.slane %v844_v37, 2  ;;  %v857_v48 = vrot.slane %v856_v53, 1 }
 0x380   :  { %1038 = vmatpush.msrb.mxu3 %v1459_v21  ;;  %993 = vmatpush.msrb.mxu2 %v916_v34 }
 0x381   :  { %v846_v49 = vadd.f32 %v845_v42, %v844_v37  ;;  %v858_v3 = vadd.f32 %v857_v48, %v856_v53  ;;  %v875_v37 = vld [vmem:[%s2679_s13] sm:$0x1] }
 0x382   :  { %1039 = vmatpush.msrb.mxu3 %v1458_v35 }
 0x383   :  { %v847_v55 = vrot.slane %v846_v49, 1  ;;  %v859_v63 = vmul.f32 0.001953125, %v858_v3  ;;  %v1072_v3 = vld [vmem:[%s2673_s7 + $0x78] sm:$0xff] }
 0x384   :  { %1073 = vmatpush.msra.mxu0 %v1072_v3  ;;  %1106 = vmatpush.msrb.mxu1 %v1072_v3  ;;  %v1489_v3 = vld [vmem:[%s2680_s5 + $0xe8] sm:$0xff] }
 0x385   :  { %v848_v8 = vadd.f32 %v847_v55, %v846_v49 }
 0x387   :  { %v849_v7 = vmul.f32 0.001953125, %v848_v8  ;;  %v1071_v8 = vld [vmem:[%s2673_s7 + $0x70] sm:$0xff] }
 0x388   :  { %1074 = vmatpush.msra.mxu0 %v1071_v8  ;;  %1107 = vmatpush.msrb.mxu1 %v1071_v8 }
 0x389   :  { %v860_v0 = vmul.f32 %v849_v7, %v849_v7 }
 0x38a   :  { %1075 = vmatpush.msra.mxu0 %v1070_v9  ;;  %1108 = vmatpush.msrb.mxu1 %v1070_v9  ;;  %v1488_v9 = vld [vmem:[%s2680_s5 + $0xe0] sm:$0xff] }
 0x38b   :  { %v861_v20 = vsub.f32 %v859_v63, %v860_v0 }
 0x38c   :  { %1076 = vmatpush.msra.mxu0 %v1069_v5  ;;  %1109 = vmatpush.msrb.mxu1 %v1069_v5 }
 0x38d   :  { %v863_v25 = vadd.f32 1e-05, %v861_v20  ;;  %v1063_v20 = vld [vmem:[%s2673_s7 + $0x30] sm:$0xff] }
 0x38e   :  { %1077 = vmatpush.msra.mxu0 %v1068_v57  ;;  %1110 = vmatpush.msrb.mxu1 %v1068_v57  ;;  %v1226_v57 = vld [vmem:[%s2680_s5 + $0x78] sm:$0xff] }
 0x38f   :  { %1541 = vrsqrt.f32 %v863_v25  ;;  %vm870_vm12 = vweird.f32 %v863_v25  ;;  %1273 = vmatpush.msra.mxu3 %v1226_v57  ;;  %v1499_v57 = vld [vmem:[%s2680_s5 + $0x128] sm:$0xff] }
 0x390   :  { %1078 = vmatpush.msra.mxu0 %v1067_v15  ;;  %1111 = vmatpush.msrb.mxu1 %v1067_v15  ;;  %v1487_v15 = vld [vmem:[%s2680_s5 + $0xd8] sm:$0xff] }
 0x392   :  { %1079 = vmatpush.msra.mxu0 %v1066_v16  ;;  %1112 = vmatpush.msrb.mxu1 %v1066_v16  ;;  %v2469_v16 = vld [vmem:[%s2680_s5 + $0x178] sm:$0xff] }
 0x394   :  { %1080 = vmatpush.msra.mxu0 %v1065_v58  ;;  %1113 = vmatpush.msrb.mxu1 %v1065_v58 }
 0x395   :  { %v1542_v36 = vpop.eup %1541 }
 0x396   :  { %v865_v22 = vmul.f32 %v1542_v36, %v863_v25  ;;  %vm871_vm11 = vweird.f32 %v1542_v36  ;;  %1081 = vmatpush.msra.mxu0 %v1064_v19  ;;  %1114 = vmatpush.msrb.mxu1 %v1064_v19  ;;  %v1059_v25 = vld [vmem:[%s2673_s7 + $0x10] sm:$0xff] }
 0x397   :  { %vm872_vm13 = vmor %vm870_vm12, %vm871_vm11 }
 0x398   :  { %v866_v27 = vmul.f32 %v1542_v36, %v865_v22  ;;  %1082 = vmatpush.msra.mxu0 %v1063_v20  ;;  %1115 = vmatpush.msrb.mxu1 %v1063_v20  ;;  %v1224_v20 = vld [vmem:[%s2680_s5 + $0x68] sm:$0xff] }
 0x39a   :  { %v867_v28 = vmul.f32 0.5, %v866_v27  ;;  %1083 = vmatpush.msra.mxu0 %v1062_v24  ;;  %1116 = vmatpush.msrb.mxu1 %v1062_v24  ;;  %v1485_v24 = vld [vmem:[%s2680_s5 + $0xc8] sm:$0xff] }
 0x39c   :  { %v868_v41 = vsub.f32 1.5, %v867_v28  ;;  %1084 = vmatpush.msra.mxu0 %v1061_v12  ;;  %1117 = vmatpush.msrb.mxu1 %v1061_v12  ;;  %v2493_v12 = vld [vmem:[%s2680_s5 + $0x168] sm:$0xff] }
 0x39e   :  { %v869_v30 = vmul.f32 %v1542_v36, %v868_v41  ;;  %1085 = vmatpush.msra.mxu0 %v1060_v13  ;;  %1118 = vmatpush.msrb.mxu1 %v1060_v13 }
 0x3a0   :  { %v873_v47 = vsel %vm872_vm13, %v1542_v36, %v869_v30  ;;  %1086 = vmatpush.msra.mxu0 %v1059_v25  ;;  %1119 = vmatpush.msrb.mxu1 %v1059_v25 }
 0x3a1   :  { %v874_v53 = vmul.f32 %v873_v47, %v862_v29 }
 0x3a2   :  { %1087 = vmatpush.msra.mxu0 %v1058_v26  ;;  %1120 = vmatpush.msrb.mxu1 %v1058_v26  ;;  %v1223_v26 = vld [vmem:[%s2680_s5 + $0x60] sm:$0xff] }
 0x3a3   :  { %v876_v38 = vmul.f32 %v874_v53, %v849_v7  ;;  %v879_v39 = vperm.slane %v874_v53, 0 }
 0x3a4   :  { %1088 = vmatpush.msra.mxu0 %v1057_v17  ;;  %1121 = vmatpush.msrb.mxu1 %v1057_v17  ;;  %v1484_v17 = vld [vmem:[%s2680_s5 + $0xc0] sm:$0xff] }
 0x3a5   :  { %v877_v40 = vsub.f32 %v875_v37, %v876_v38  ;;  %v881_v42 = vmul.f32 %v879_v39, %v2195_v45  ;;  %v882_v44 = vmul.f32 %v879_v39, %v2201_v52  ;;  %v883_v46 = vmul.f32 %v879_v39, %v2207_v2 }
 0x3a6   :  { %v884_v48 = vmul.f32 %v879_v39, %v2213_v10  ;;  %1319 = vmatpush.msrb.mxu0 %v2469_v16 }
 0x3a7   :  { %v886_v43 = vperm.slane %v877_v40, 0 }
 0x3a9   :  { %v888_v49 = vadd.f32 %v886_v43, %v881_v42  ;;  %v889_v50 = vadd.f32 %v886_v43, %v882_v44  ;;  %v890_v51 = vadd.f32 %v886_v43, %v883_v46  ;;  %v891_v54 = vadd.f32 %v886_v43, %v884_v48 }
 0x3ab   :  { %v892_v55 = vmax.f32 %v888_v49, 0.0  ;;  %v893_v60 = vmax.f32 %v889_v50, 0.0  ;;  %v894_v61 = vmax.f32 %v890_v51, 0.0  ;;  %v895_v62 = vmax.f32 %v891_v54, 0.0 }
 0x3ad   :  { %896 = vst [vmem:[#allocation3 + $0x8] sm:$0xff] %v892_v55  ;;  %965 = vmatmul.f32.vlgmr.msra.gmra.mxu1 %v892_v55 }
 0x3ae   :  { %897 = vst [vmem:[#allocation3 + $0x10] sm:$0xff] %v893_v60 }
 0x3af   :  { %898 = vst [vmem:[#allocation3 + $0x18] sm:$0xff] %v894_v61 }
 0x3b0   :  { %899 = vst [vmem:[#allocation3 + $0x20] sm:$0xff] %v895_v62 }
 0x3b4   :  { %v900_v6 = vld [vmem:[#allocation3 + $0x7] sm:$0xff] }
 0x3b5   :  { %968 = vmatmul.f32.gmra.mxu1 %v893_v60  ;;  %1456 = vmatmul.msk.f32.vlgmr.msrb.gmra.mxu2 %vm1836_vm4, %v900_v6  ;;  %v908_v7 = vld [vmem:[#allocation3 + $0x9] sm:$0xff] }
 0x3b6   :  { %1040 = vmatmul.f32.vlgmr.msrb.gmra.mxu3 %v908_v7  ;;  %v901_v11 = vld [vmem:[#allocation3 + $0xf] sm:$0xff]  ;;  %v902_v59 = vld [vmem:[#allocation3 + $0x17] sm:$0xff] }
 0x3b7   :  { %v909_v18 = vld [vmem:[#allocation3 + $0x11] sm:$0xff]  ;;  %v910_v63 = vld [vmem:[#allocation3 + $0x19] sm:$0xff]  ;;  %v911_v4 = vld [vmem:[#allocation3 + $0x21] sm:$0xff] }
 0x3b8   :  { %v903_v0 = vld [vmem:[#allocation3 + $0x1f] sm:$0xff]  ;;  %v1491_v60 = vld [vmem:[%s2680_s5 + $0xf8] sm:$0xff] }
 0x3b9   :  { %1244 = vmatpush.msra.mxu2 %v1491_v60  ;;  %v2566_v60 = vld [vmem:[%s2680_s5 + $0x138] sm:$0xff] }
 0x3bd   :  { %971 = vmatmul.f32.gmra.mxu1 %v894_v61  ;;  %997 = vmatmul.f32.gmra.mxu2 %v901_v11 }
 0x3be   :  { %1474 = vmatmul.msk.f32.gmra.mxu3 %vm1867_vm5, %v909_v18 }
 0x3c5   :  { %974 = vmatmul.f32.gmra.mxu1 %v895_v62  ;;  %1457 = vmatmul.msk.f32.gmra.mxu2 %vm1898_vm6, %v902_v59  ;;  %v1490_v62 = vld [vmem:[%s2680_s5 + $0xf0] sm:$0xff] }
 0x3c6   :  { %1046 = vmatmul.f32.gmra.mxu3 %v910_v63  ;;  %1245 = vmatpush.msra.mxu2 %v1490_v62  ;;  %v1225_v63 = vld [vmem:[%s2680_s5 + $0x70] sm:$0xff] }
 0x3c7   :  { %1274 = vmatpush.msra.mxu3 %v1225_v63  ;;  %v1478_v62 = vld [vmem:[%s2680_s5 + $0x90] sm:$0xff]  ;;  %v1214_v63 = vld [vmem:[%s2680_s5 + $0x18] sm:$0xff] }
 0x3c8   :  { %1246 = vmatpush.msra.mxu2 %v1489_v3 }
 0x3c9   :  { %1275 = vmatpush.msra.mxu3 %v1224_v20  ;;  %v1212_v20 = vld [vmem:[%s2680_s5 + $0x8] sm:$0xff] }
 0x3ca   :  { %1247 = vmatpush.msra.mxu2 %v1488_v9  ;;  %v1500_v9 = vld [vmem:[%s2680_s5 + $0x130] sm:$0xff] }
 0x3cb   :  { %1276 = vmatpush.msra.mxu3 %v1223_v26 }
 0x3cc   :  { %1248 = vmatpush.msra.mxu2 %v1487_v15  ;;  %v1215_v15 = vld [vmem:[%s2680_s5 + $0x20] sm:$0xff] }
 0x3cd   :  { %1003 = vmatmul.f32.gmra.mxu2 %v903_v0  ;;  %v1486_v0 = vld [vmem:[%s2680_s5 + $0xd0] sm:$0xff] }
 0x3ce   :  { %1475 = vmatmul.msk.f32.gmra.mxu3 %vm1929_vm7, %v911_v4  ;;  %v2481_v4 = vld [vmem:[%s2680_s5 + $0x170] sm:$0xff]  ;;  %1249 = vmatpush.msra.mxu2 %v1486_v0  ;;  %v1497_v0 = vld [vmem:[%s2680_s5 + $0x118] sm:$0xff] }
 0x3cf   :  { %1320 = vmatpush.msrb.mxu0 %v2481_v4 }
 0x3d0   :  { %1250 = vmatpush.msra.mxu2 %v1485_v24  ;;  %v1211_v24 = vld [vmem:[%s2680_s5] sm:$0xff] }
 0x3d1   :  { %1321 = vmatpush.msrb.mxu0 %v2493_v12 }
 0x3d2   :  { %1251 = vmatpush.msra.mxu2 %v1484_v17 }
 0x42a   :  { %v966_v31 = vpop.f32.mrf.mxu1 }
 0x432   :  { %v969_v35 = vpop.f32.mrf.mxu1 }
 0x438   :  { %v995_v32 = vpop.f32.mrf.mxu2 }
 0x439   :  { %v996_v33 = vadd.f32 %v995_v32, %v966_v31  ;;  %v1041_v21 = vpop.f32.mrf.mxu3  ;;  %v2505_v31 = vld [vmem:[%s2680_s5 + $0x160] sm:$0xff] }
 0x43a   :  { %v972_v30 = vpop.f32.mrf.mxu1  ;;  %1322 = vmatpush.msrb.mxu0 %v2505_v31 }
 0x43b   :  { %v2428_v34 = vadd.f32 %v1041_v21, %v996_v33  ;;  %v1222_v21 = vld [vmem:[%s2680_s5 + $0x58] sm:$0xff] }
 0x43c   :  { %1277 = vmatpush.msra.mxu3 %v1222_v21 }
 0x43d   :  { %v1102_v36 = vmul.f32 %v2428_v34, %v2428_v34  ;;  %1089 = vmatmul.f32.vlgmr.msra.gmra.mxu0 %v2428_v34 }
 0x43f   :  { %1122 = vmatmul.f32.vlgmr.msrb.gmra.mxu1 %v1102_v36  ;;  %v2517_v36 = vld [vmem:[%s2680_s5 + $0x158] sm:$0xff] }
 0x440   :  { %v998_v22 = vpop.f32.mrf.mxu2  ;;  %1323 = vmatpush.msrb.mxu0 %v2517_v36 }
 0x441   :  { %v999_v27 = vadd.f32 %v998_v22, %v969_v35  ;;  %v1044_v28 = vpop.f32.mrf.mxu3  ;;  %v1483_v35 = vld [vmem:[%s2680_s5 + $0xb8] sm:$0xff] }
 0x442   :  { %v975_v40 = vpop.f32.mrf.mxu1  ;;  %1252 = vmatpush.msra.mxu2 %v1483_v35  ;;  %v1170_v35 = vld [vmem:[%s2682_s15] sm:$0x1] }
 0x443   :  { %v2433_v41 = vadd.f32 %v1044_v28, %v999_v27  ;;  %v1221_v28 = vld [vmem:[%s2680_s5 + $0x50] sm:$0xff] }
 0x444   :  { %1278 = vmatpush.msra.mxu3 %v1221_v28 }
 0x445   :  { %1092 = vmatmul.f32.gmra.mxu0 %v2433_v41  ;;  %v1103_v29 = vmul.f32 %v2433_v41, %v2433_v41 }
 0x447   :  { %1125 = vmatmul.f32.gmra.mxu1 %v1103_v29  ;;  %v1482_v29 = vld [vmem:[%s2680_s5 + $0xb0] sm:$0xff] }
 0x448   :  { %v1001_v47 = vpop.f32.mrf.mxu2  ;;  %1253 = vmatpush.msra.mxu2 %v1482_v29 }
 0x449   :  { %v1002_v53 = vadd.f32 %v1001_v47, %v972_v30  ;;  %v1047_v37 = vpop.f32.mrf.mxu3  ;;  %v2528_v30 = vld [vmem:[%s2680_s5 + $0x150] sm:$0xff]  ;;  %v1220_v47 = vld [vmem:[%s2680_s5 + $0x48] sm:$0xff] }
 0x44a   :  { %1324 = vmatpush.msrb.mxu0 %v2528_v30  ;;  %1279 = vmatpush.msra.mxu3 %v1220_v47 }
 0x44b   :  { %v2438_v38 = vadd.f32 %v1047_v37, %v1002_v53  ;;  %v1481_v53 = vld [vmem:[%s2680_s5 + $0xa8] sm:$0xff] }
 0x44c   :  { %1254 = vmatpush.msra.mxu2 %v1481_v53 }
 0x44d   :  { %1095 = vmatmul.f32.gmra.mxu0 %v2438_v38  ;;  %v1104_v39 = vmul.f32 %v2438_v38, %v2438_v38 }
 0x44f   :  { %1128 = vmatmul.f32.gmra.mxu1 %v1104_v39 }
 0x450   :  { %v1004_v42 = vpop.f32.mrf.mxu2 }
 0x451   :  { %v1005_v43 = vadd.f32 %v1004_v42, %v975_v40  ;;  %v1050_v44 = vpop.f32.mrf.mxu3  ;;  %v2540_v40 = vld [vmem:[%s2680_s5 + $0x148] sm:$0xff]  ;;  %v1219_v42 = vld [vmem:[%s2680_s5 + $0x40] sm:$0xff] }
 0x452   :  { %1325 = vmatpush.msrb.mxu0 %v2540_v40  ;;  %1280 = vmatpush.msra.mxu3 %v1219_v42 }
 0x453   :  { %v2443_v46 = vadd.f32 %v1050_v44, %v1005_v43  ;;  %v1480_v43 = vld [vmem:[%s2680_s5 + $0xa0] sm:$0xff] }
 0x454   :  { %1255 = vmatpush.msra.mxu2 %v1480_v43 }
 0x455   :  { %1098 = vmatmul.f32.gmra.mxu0 %v2443_v46  ;;  %v1105_v48 = vmul.f32 %v2443_v46, %v2443_v46 }
 0x457   :  { %1131 = vmatmul.f32.gmra.mxu1 %v1105_v48 }
 0x4ba   :  { %v1090_v49 = vpop.f32.mrf.mxu0 }
 0x4bc   :  { %v1123_v50 = vpop.f32.mrf.mxu1 }
 0x4c2   :  { %v1093_v51 = vpop.f32.mrf.mxu0 }
 0x4c3   :  { %v1135_v8 = vadd.f32 %v1093_v51, %v1090_v49  ;;  %v2552_v49 = vld [vmem:[%s2680_s5 + $0x140] sm:$0xff]  ;;  %v1479_v51 = vld [vmem:[%s2680_s5 + $0x98] sm:$0xff] }
 0x4c4   :  { %v1126_v54 = vpop.f32.mrf.mxu1  ;;  %1326 = vmatpush.msrb.mxu0 %v2552_v49  ;;  %1256 = vmatpush.msra.mxu2 %v1479_v51 }
 0x4c5   :  { %v1145_v5 = vadd.f32 %v1126_v54, %v1123_v50  ;;  %v1218_v50 = vld [vmem:[%s2680_s5 + $0x38] sm:$0xff] }
 0x4c6   :  { %1281 = vmatpush.msra.mxu3 %v1218_v50  ;;  %1327 = vmatpush.msrb.mxu0 %v2566_v60 }
 0x4c7   :  { %1257 = vmatpush.msra.mxu2 %v1478_v62 }
 0x4c8   :  { %1328 = vmatpush.msrb.mxu0 %v1500_v9 }
 0x4ca   :  { %v1096_v55 = vpop.f32.mrf.mxu0  ;;  %1329 = vmatpush.msrb.mxu0 %v1499_v57 }
 0x4cb   :  { %v1136_v6 = vadd.f32 %v1135_v8, %v1096_v55 }
 0x4cc   :  { %v1129_v61 = vpop.f32.mrf.mxu1 }
 0x4cd   :  { %v1146_v11 = vadd.f32 %v1145_v5, %v1129_v61  ;;  %v1217_v61 = vld [vmem:[%s2680_s5 + $0x30] sm:$0xff]  ;;  %v1216_v5 = vld [vmem:[%s2680_s5 + $0x28] sm:$0xff] }
 0x4ce   :  { %1282 = vmatpush.msra.mxu3 %v1217_v61 }
 0x4d0   :  { %1283 = vmatpush.msra.mxu3 %v1216_v5 }
 0x4d2   :  { %v1099_v7 = vpop.f32.mrf.mxu0  ;;  %1284 = vmatpush.msra.mxu3 %v1215_v15 }
 0x4d3   :  { %v1137_v18 = vadd.f32 %v1136_v6, %v1099_v7  ;;  %v1477_v6 = vld [vmem:[%s2680_s5 + $0x88] sm:$0xff] }
 0x4d4   :  { %v1132_v59 = vpop.f32.mrf.mxu1  ;;  %1258 = vmatpush.msra.mxu2 %v1477_v6  ;;  %1285 = vmatpush.msra.mxu3 %v1214_v63 }
 0x4d5   :  { %v1138_v58 = vrot.slane %v1137_v18, 4  ;;  %v1147_v19 = vadd.f32 %v1146_v11, %v1132_v59  ;;  %v1476_v11 = vld [vmem:[%s2680_s5 + $0x80] sm:$0xff] }
 0x4d6   :  { %v1498_v59 = vld [vmem:[%s2680_s5 + $0x120] sm:$0xff]  ;;  %1259 = vmatpush.msra.mxu2 %v1476_v11 }
 0x4d7   :  { %v1139_v13 = vadd.f32 %v1138_v58, %v1137_v18  ;;  %v1148_v25 = vrot.slane %v1147_v19, 4  ;;  %1330 = vmatpush.msrb.mxu0 %v1498_v59  ;;  %v1213_v58 = vld [vmem:[%s2680_s5 + $0x10] sm:$0xff] }
 0x4d8   :  { %1520 = vmatpush.msrb.mxu2 %v2469_v16  ;;  %1286 = vmatpush.msra.mxu3 %v1213_v58  ;;  %v1495_v16 = vld [vmem:[%s2680_s5 + $0x108] sm:$0xff] }
 0x4d9   :  { %v1140_v32 = vrot.slane %v1139_v13, 2  ;;  %v1149_v33 = vadd.f32 %v1148_v25, %v1147_v19  ;;  %v1496_v19 = vld [vmem:[%s2680_s5 + $0x110] sm:$0xff]  ;;  %1331 = vmatpush.msrb.mxu0 %v1497_v0 }
 0x4da   :  { %1521 = vmatpush.msrb.mxu2 %v2481_v4  ;;  %1287 = vmatpush.msra.mxu3 %v1212_v20  ;;  %v1494_v4 = vld [vmem:[%s2680_s5 + $0x100] sm:$0xff] }
 0x4db   :  { %v1141_v22 = vadd.f32 %v1140_v32, %v1139_v13  ;;  %v1150_v27 = vrot.slane %v1149_v33, 2  ;;  %1332 = vmatpush.msrb.mxu0 %v1496_v19  ;;  %v1157_v32 = vld [vmem:[%s2681_s14] sm:$0x1] }
 0x4dc   :  { %1522 = vmatpush.msrb.mxu2 %v2493_v12  ;;  %1288 = vmatpush.msra.mxu3 %v1211_v24 }
 0x4dd   :  { %v1142_v37 = vrot.slane %v1141_v22, 1  ;;  %v1151_v39 = vadd.f32 %v1150_v27, %v1149_v33  ;;  %1333 = vmatpush.msrb.mxu0 %v1495_v16 }
 0x4de   :  { %1523 = vmatpush.msrb.mxu2 %v2505_v31 }
 0x4df   :  { %v1143_v44 = vadd.f32 %v1142_v37, %v1141_v22  ;;  %v1152_v48 = vrot.slane %v1151_v39, 1  ;;  %1334 = vmatpush.msrb.mxu0 %v1494_v4 }
 0x4e0   :  { %1524 = vmatpush.msrb.mxu2 %v2517_v36 }
 0x4e1   :  { %v2561_v54 = vmul.f32 0.001953125, %v1143_v44  ;;  %v1153_v55 = vadd.f32 %v1152_v48, %v1151_v39 }
 0x4e2   :  { %1525 = vmatpush.msrb.mxu2 %v2528_v30 }
 0x4e3   :  { %v1155_v3 = vmul.f32 %v2561_v54, %v2561_v54  ;;  %v1154_v8 = vmul.f32 0.001953125, %v1153_v55 }
 0x4e4   :  { %1526 = vmatpush.msrb.mxu2 %v2540_v40 }
 0x4e5   :  { %v1156_v7 = vsub.f32 %v1154_v8, %v1155_v3 }
 0x4e6   :  { %1527 = vmatpush.msrb.mxu2 %v2552_v49 }
 0x4e7   :  { %v1158_v18 = vadd.f32 1e-05, %v1156_v7 }
 0x4e8   :  { %1528 = vmatpush.msrb.mxu2 %v2566_v60 }
 0x4e9   :  { %1543 = vrsqrt.f32 %v1158_v18  ;;  %vm1165_vm15 = vweird.f32 %v1158_v18 }
 0x4ea   :  { %1529 = vmatpush.msrb.mxu2 %v1500_v9 }
 0x4ec   :  { %1530 = vmatpush.msrb.mxu2 %v1499_v57 }
 0x4ee   :  { %1531 = vmatpush.msrb.mxu2 %v1498_v59 }
 0x4ef   :  { %v1544_v13 = vpop.eup %1543 }
 0x4f0   :  { %v1160_v25 = vmul.f32 %v1544_v13, %v1158_v18  ;;  %vm1166_vm14 = vweird.f32 %v1544_v13  ;;  %1532 = vmatpush.msrb.mxu2 %v1497_v0 }
 0x4f1   :  { %vm1167_vm0 = vmor %vm1165_vm15, %vm1166_vm14 }
 0x4f2   :  { %v1161_v26 = vmul.f32 %v1544_v13, %v1160_v25  ;;  %1533 = vmatpush.msrb.mxu2 %v1496_v19 }
 0x4f4   :  { %v1162_v12 = vmul.f32 0.5, %v1161_v26  ;;  %1534 = vmatpush.msrb.mxu2 %v1495_v16 }
 0x4f6   :  { %v1163_v17 = vsub.f32 1.5, %v1162_v12  ;;  %1535 = vmatpush.msrb.mxu2 %v1494_v4 }
 0x4f8   :  { %v1164_v33 = vmul.f32 %v1544_v13, %v1163_v17 }
 0x4fa   :  { %v1168_v31 = vsel %vm1167_vm0, %v1544_v13, %v1164_v33 }
 0x4fb   :  { %v1169_v21 = vmul.f32 %v1168_v31, %v1157_v32 }
 0x4fd   :  { %v1171_v36 = vmul.f32 %v1169_v21, %v2561_v54  ;;  %v1174_v22 = vperm.slane %v1169_v21, 0 }
 0x4ff   :  { %v1172_v27 = vsub.f32 %v1170_v35, %v1171_v36  ;;  %v1176_v28 = vmul.f32 %v1174_v22, %v2428_v34  ;;  %v1177_v30 = vmul.f32 %v1174_v22, %v2433_v41  ;;  %v1178_v47 = vmul.f32 %v1174_v22, %v2438_v38 }
 0x500   :  { %v1179_v53 = vmul.f32 %v1174_v22, %v2443_v46 }
 0x501   :  { %v1181_v29 = vperm.slane %v1172_v27, 0 }
 0x503   :  { %v1183_v37 = vadd.f32 %v1181_v29, %v1176_v28  ;;  %v1184_v39 = vadd.f32 %v1181_v29, %v1177_v30  ;;  %v1185_v40 = vadd.f32 %v1181_v29, %v1178_v47  ;;  %v1186_v42 = vadd.f32 %v1181_v29, %v1179_v53 }
 0x505   :  { %v1187_v43 = vmax.f32 %v1183_v37, 0.0  ;;  %v1188_v44 = vmax.f32 %v1184_v39, 0.0  ;;  %v1189_v48 = vmax.f32 %v1185_v40, 0.0  ;;  %v1190_v49 = vmax.f32 %v1186_v42, 0.0 }
 0x507   :  { %1260 = vmatmul.f32.vlgmr.msra.gmra.mxu2 %v1187_v43  ;;  %1191 = vst [vmem:[#allocation3 + $0x8] sm:$0xff] %v1187_v43 }
 0x508   :  { %1192 = vst [vmem:[#allocation3 + $0x10] sm:$0xff] %v1188_v44 }
 0x509   :  { %1193 = vst [vmem:[#allocation3 + $0x18] sm:$0xff] %v1189_v48 }
 0x50a   :  { %1194 = vst [vmem:[#allocation3 + $0x20] sm:$0xff] %v1190_v49 }
 0x50e   :  { %v1195_v34 = vld [vmem:[#allocation3 + $0x7] sm:$0xff] }
 0x50f   :  { %1263 = vmatmul.f32.gmra.mxu2 %v1188_v44  ;;  %1492 = vmatmul.msk.f32.vlgmr.msra.gmra.mxu3 %vm1836_vm4, %v1195_v34  ;;  %v1203_v41 = vld [vmem:[#allocation3 + $0x9] sm:$0xff] }
 0x510   :  { %1335 = vmatmul.f32.vlgmr.msrb.gmra.mxu0 %v1203_v41  ;;  %v1196_v38 = vld [vmem:[#allocation3 + $0xf] sm:$0xff]  ;;  %v1197_v50 = vld [vmem:[#allocation3 + $0x17] sm:$0xff] }
 0x511   :  { %v1204_v46 = vld [vmem:[#allocation3 + $0x11] sm:$0xff]  ;;  %v1205_v51 = vld [vmem:[#allocation3 + $0x19] sm:$0xff]  ;;  %v1206_v55 = vld [vmem:[#allocation3 + $0x21] sm:$0xff] }
 0x512   :  { %v1198_v54 = vld [vmem:[#allocation3 + $0x1f] sm:$0xff] }
 0x517   :  { %1266 = vmatmul.f32.gmra.mxu2 %v1189_v48  ;;  %1292 = vmatmul.f32.gmra.mxu3 %v1196_v38 }
 0x518   :  { %1510 = vmatmul.msk.f32.gmra.mxu0 %vm1867_vm5, %v1204_v46 }
 0x51f   :  { %1269 = vmatmul.f32.gmra.mxu2 %v1190_v49  ;;  %1493 = vmatmul.msk.f32.gmra.mxu3 %vm1898_vm6, %v1197_v50 }
 0x520   :  { %1341 = vmatmul.f32.gmra.mxu0 %v1205_v51 }
 0x527   :  { %1298 = vmatmul.f32.gmra.mxu3 %v1198_v54  ;;  %1511 = vmatmul.msk.f32.vlgmr.msrb.gmra.mxu2 %vm1929_vm7, %v1206_v55 }
 0x58a   :  { %v1261_v56 = vpop.f32.mrf.mxu2 }
 0x58d   :  { %v1336_v60 = vpop.f32.mrf.mxu0 }
 0x592   :  { %v1264_v61 = vpop.f32.mrf.mxu2  ;;  %v1290_v62 = vpop.f32.mrf.mxu3 }
 0x593   :  { %v1291_v3 = vadd.f32 %v1290_v62, %v1261_v56 }
 0x595   :  { %v1348_v1 = vadd.f32 %v1336_v60, %v1291_v3  ;;  %v1339_v14 = vpop.f32.mrf.mxu0 }
 0x597   :  { %v1352_v8 = vadd.f32 %v1348_v1, %v2195_v45 }
 0x599   :  { %1356 = vst [vmem:[%s2683_s16] sm:$0xff] %v1352_v8 }
 0x59a   :  { %v1267_v9 = vpop.f32.mrf.mxu2  ;;  %v1293_v5 = vpop.f32.mrf.mxu3 }
 0x59b   :  { %v1294_v6 = vadd.f32 %v1293_v5, %v1264_v61 }
 0x59d   :  { %v1349_v7 = vadd.f32 %v1339_v14, %v1294_v6  ;;  %v1342_v18 = vpop.f32.mrf.mxu0 }
 0x59f   :  { %v1353_v23 = vadd.f32 %v1349_v7, %v2201_v52 }
 0x5a1   :  { %1357 = vst [vmem:[%s2683_s16 + $0x8] sm:$0xff] %v1353_v23 }
 0x5a2   :  { %v1270_v57 = vpop.f32.mrf.mxu2  ;;  %v1296_v15 = vpop.f32.mrf.mxu3 }
 0x5a3   :  { %v1297_v11 = vadd.f32 %v1296_v15, %v1267_v9 }
 0x5a5   :  { %v1350_v45 = vadd.f32 %v1342_v18, %v1297_v11 }
 0x5a7   :  { %v1354_v59 = vadd.f32 %v1350_v45, %v2207_v2 }
 0x5a9   :  { %1358 = vst [vmem:[%s2683_s16 + $0x10] sm:$0xff] %v1354_v59 }
 0x5aa   :  { %v1299_v63 = vpop.f32.mrf.mxu3  ;;  %v1345_v58 = vpop.f32.mrf.mxu2 }
 0x5ab   :  { %v1300_v0 = vadd.f32 %v1299_v63, %v1270_v57 }
 0x5ad   :  { %v1351_v19 = vadd.f32 %v1345_v58, %v1300_v0 }
 0x5af   :  { %v1355_v52 = vadd.f32 %v1351_v19, %v2213_v10 }
 0x5b1   :  { %1359 = vst [vmem:[%s2683_s16 + $0x18] sm:$0xff] %v1355_v52 }

</bundles_post_ra>
